<compile_context>
chip_gen: v7x
topology: tpu7x:2x2x1
jax: 0.10.0
libtpu: 0.0.40
codegen_flags: <defaults>
</compile_context>

<pallas_src>
import functools

import jax
import jax.numpy as jnp
from jax.experimental import pallas as pl
from jax.experimental.pallas import tpu as pltpu

K = 7            # spatial-attention conv kernel size
PAD = K // 2     # = 3 (same padding)


def _cbam_kernel(x_ref, w1_ref, w2_ref, wsa_ref, o_ref, pvx_ref, *, H, W):
    # x_ref : (1, C, H*W) VMEM block (one batch element per grid step)
    # w1_ref: (Cr, C)     VMEM  (fc1.weight, used in column form)
    # w2_ref: (C, Cr)     VMEM  (fc2.weight, used in column form)
    # wsa   : (2*K*K,)    SMEM  (spatial conv weights, [in_ch, kh, kw] flattened)
    # pvx   : (2, FLATP)  VMEM scratch: vertically zero-padded avg/max maps,
    #                     flattened row-major with a PAD-element front offset.
    x = x_ref[0].astype(jnp.float32)                                 # (C, HW)
    C, HW = x.shape
    inv_hw = 1.0 / float(H * W)

    # ---------------- channel attention (stacked avg/max MLP) ----------------
    avg_c = jnp.sum(x, axis=1, keepdims=True) * inv_hw               # (C, 1)
    max_c = jnp.max(x, axis=1, keepdims=True)                        # (C, 1)
    lane = jax.lax.broadcasted_iota(jnp.int32, (C, 2), 1)
    stacked = jnp.where(lane == 0, avg_c, max_c)                     # (C, 2)

    h = jnp.maximum(
        jnp.dot(w1_ref[...], stacked, preferred_element_type=jnp.float32),
        0.0)                                                         # (Cr, 2)
    o2 = jnp.dot(w2_ref[...], h, preferred_element_type=jnp.float32)  # (C, 2)
    ca = jax.nn.sigmoid(jnp.sum(o2, axis=1, keepdims=True))          # (C, 1)
    x1 = x * ca                                                      # (C, HW)

    # ---------------- spatial attention ----------------
    amap = jnp.mean(x1, axis=0, keepdims=True)                       # (1, HW)
    mmap = jnp.max(x1, axis=0, keepdims=True)                        # (1, HW)

    # Flat, vertically-padded maps: pvx[c, PAD + r*W + j] = map[c, r-PAD, j]
    # (zeros for r outside [PAD, PAD+H)).  Clearing the whole scratch is ~6
    # full-width vector stores per step and keeps correctness independent of
    # megacore sharding of the (parallel) batch axis.
    pvx_ref[...] = jnp.zeros(pvx_ref.shape, jnp.float32)
    off = PAD + PAD * W
    pvx_ref[0:1, off:off + HW] = amap
    pvx_ref[1:2, off:off + HW] = mmap

    # Output n = i*W + j reads pvx[c, n + kh*W + kw]; horizontal edge handled
    # by a per-kw column mask (valid iff 0 <= j + kw - PAD < W).
    colj = jax.lax.broadcasted_iota(jnp.int32, (1, HW), 1) % W       # j index
    acc = jnp.zeros((1, HW), jnp.float32)
    for kw in range(K):
        jq = colj + (kw - PAD)
        valid = jnp.logical_and(jq >= 0, jq < W)
        part = jnp.zeros((1, HW), jnp.float32)
        for ci in range(2):
            for kh in range(K):
                s = kh * W + kw                                      # static
                wgt = wsa_ref[ci * K * K + kh * K + kw]              # SMEM scalar
                part = part + pvx_ref[ci:ci + 1, s:s + HW] * wgt     # lane-dense
        acc = acc + jnp.where(valid, part, 0.0)
    sa = jax.nn.sigmoid(acc)                                         # (1, HW)

    out = jnp.maximum(x1 * sa + x, 0.0)                              # relu(x1*sa + x)
    o_ref[0] = out.astype(o_ref.dtype)                               # full-width store


@jax.jit
def cbam_pallas(x_nchw, w1, w2, wsa):
    """x_nchw: (B,C,H,W); w1: (Cr,C); w2: (C,Cr); wsa: (2,K,K). Returns (B,C,H,W)."""
    B, C, H, W = x_nchw.shape
    Cr = w1.shape[0]
    HW = H * W

    x2d = x_nchw.reshape(B, C, HW)                    # free reshape (contiguous dims)
    w1f = w1.astype(jnp.float32)                      # (Cr, C)
    w2f = w2.astype(jnp.float32)                      # (C, Cr)
    wsa_flat = wsa.reshape(-1).astype(jnp.float32)    # (2*K*K,)

    # Flat padded-map scratch length: must hold the padded map
    # (PAD + (H+2*PAD)*W) and the largest tap read ((K-1)*(W+1) + H*W).
    flatp = max(PAD + (H + 2 * PAD) * W, (K - 1) * (W + 1) + HW)

    kernel = functools.partial(_cbam_kernel, H=H, W=W)
    out2d = pl.pallas_call(
        kernel,
        out_shape=jax.ShapeDtypeStruct((B, C, HW), x_nchw.dtype),
        grid_spec=pltpu.PrefetchScalarGridSpec(
            num_scalar_prefetch=0,
            grid=(B,),
            in_specs=[
                pl.BlockSpec((1, C, HW), lambda b: (b, 0, 0)),
                pl.BlockSpec((Cr, C), lambda b: (0, 0)),
                pl.BlockSpec((C, Cr), lambda b: (0, 0)),
                pl.BlockSpec(memory_space=pltpu.MemorySpace.SMEM),
            ],
            out_specs=pl.BlockSpec((1, C, HW), lambda b: (b, 0, 0)),
            scratch_shapes=[pltpu.VMEM((2, flatp), jnp.float32)],
        ),
        compiler_params=pltpu.CompilerParams(
            dimension_semantics=("parallel",)),   # batch steps independent -> v7x 2 TCs
    )(x2d, w1f, w2f, wsa_flat)
    return out2d.reshape(B, C, H, W)


def cbam_ref(x, w1, w2, wsa):
    """Pure-JAX reference matching the PyTorch forward (NCHW)."""
    avg = jnp.mean(x, axis=(2, 3))                    # (B, C)
    mx = jnp.max(x, axis=(2, 3))                      # (B, C)

    def mlp(v):
        return jnp.maximum(v @ w1.T, 0.0) @ w2.T

    ca = jax.nn.sigmoid(mlp(avg) + mlp(mx))           # (B, C)
    x1 = x * ca[:, :, None, None]
    a = jnp.mean(x1, axis=1, keepdims=True)
    m = jnp.max(x1, axis=1, keepdims=True)
    feat = jnp.concatenate([a, m], axis=1)            # (B, 2, H, W)
    conv = jax.lax.conv_general_dilated(
        feat, wsa[None], window_strides=(1, 1),
        padding=((PAD, PAD), (PAD, PAD)),
        dimension_numbers=("NCHW", "OIHW", "NCHW"))
    sa = jax.nn.sigmoid(conv)                         # (B, 1, H, W)
    x2 = x1 * sa
    return jnp.maximum(x2 + x, 0.0)


if __name__ == "__main__":
    B, C, H, W = 2, 32, 16, 16        # channel must be >= 16 (ratio=16 reduction)
    Cr = C // 16

    key = jax.random.PRNGKey(0)
    kx, k1, k2, k3 = jax.random.split(key, 4)
    x = jax.random.normal(kx, (B, C, H, W), jnp.float32)
    # deterministic synthetic weights (shapes from nn.Conv2d defs, bias=False)
    w1 = jax.random.normal(k1, (Cr, C), jnp.float32) * 0.2    # fc1: (C//16, C, 1, 1)
    w2 = jax.random.normal(k2, (C, Cr), jnp.float32) * 0.2    # fc2: (C, C//16, 1, 1)
    wsa = jax.random.normal(k3, (2, K, K), jnp.float32) * 0.1 # sa conv: (1, 2, 7, 7)

    out = jax.block_until_ready(cbam_pallas(x, w1, w2, wsa))
    ref = jax.block_until_ready(cbam_ref(x, w1, w2, wsa))

    assert out.shape == (B, C, H, W)
    if not jnp.allclose(out, ref, atol=1e-3, rtol=1e-3):
        raise AssertionError(
            f"mismatch vs reference, max abs err = {jnp.max(jnp.abs(out - ref))}")
    print("KERNEL_OK")
</pallas_src>

<mosaic_0001>
module attributes {stable_mosaic.version = 11 : i64} {
  func.func @_cbam_kernel(%arg0: i32, %arg1: memref<1x32x256xf32, #tpu.memory_space<vmem>>, %arg2: memref<2x32xf32, #tpu.memory_space<vmem>>, %arg3: memref<32x2xf32, #tpu.memory_space<vmem>>, %arg4: memref<98xf32, #tpu.memory_space<smem>>, %arg5: memref<1x32x256xf32, #tpu.memory_space<vmem>>, %arg6: memref<2x358xf32, #tpu.memory_space<vmem>>) attributes {dimension_semantics = [#tpu.dimension_semantics<parallel>], iteration_bounds = array<i64: 2>, scalar_prefetch = 0 : i64, scratch_operands = 1 : i64, tpu.core_type = #tpu.core_type<tc>, window_params = [{transform_indices = @transform_0, window_bounds = array<i64: 1, 32, 256>}, {pipeline_mode = #tpu.pipeline_mode<synchronous>, transform_indices = @transform_1, window_bounds = array<i64: 2, 32>}, {pipeline_mode = #tpu.pipeline_mode<synchronous>, transform_indices = @transform_2, window_bounds = array<i64: 32, 2>}, {transform_indices = @transform_3, window_bounds = array<i64: 98>}, {transform_indices = @transform_4, window_bounds = array<i64: 1, 32, 256>}]} {
    %c0 = arith.constant 0 : index
    %c0_0 = arith.constant 0 : index
    %c0_1 = arith.constant 0 : index
    %0 = vector.load %arg1[%c0, %c0_0, %c0_1] : memref<1x32x256xf32, #tpu.memory_space<vmem>>, vector<1x32x256xf32>
    %1 = vector.shape_cast %0 : vector<1x32x256xf32> to vector<32x256xf32>
    %cst = arith.constant dense<0.000000e+00> : vector<32xf32>
    %2 = vector.multi_reduction <add>, %1, %cst [1] : vector<32x256xf32> to vector<32xf32>
    %3 = vector.shape_cast %2 : vector<32xf32> to vector<32x1xf32>
    %cst_2 = arith.constant 3.906250e-03 : f32
    %4 = vector.broadcast %cst_2 : f32 to vector<32x1xf32>
    %5 = arith.mulf %3, %4 : vector<32x1xf32>
    %cst_3 = arith.constant dense<0xFF800000> : vector<32xf32>
    %6 = vector.multi_reduction <maximumf>, %1, %cst_3 [1] : vector<32x256xf32> to vector<32xf32>
    %7 = vector.shape_cast %6 : vector<32xf32> to vector<32x1xf32>
    %8 = tpu.iota {dimensions = array<i32: 1>} : vector<32x2xi32>
    %c0_i32 = arith.constant 0 : i32
    %9 = vector.broadcast %c0_i32 : i32 to vector<32x2xi32>
    %10 = arith.cmpi eq, %8, %9 : vector<32x2xi32>
    %11 = vector.shape_cast %5 : vector<32x1xf32> to vector<32x1xf32>
    %12 = vector.broadcast %11 : vector<32x1xf32> to vector<32x2xf32>
    %13 = vector.shape_cast %7 : vector<32x1xf32> to vector<32x1xf32>
    %14 = vector.broadcast %13 : vector<32x1xf32> to vector<32x2xf32>
    %15 = arith.select %10, %12, %14 : vector<32x2xi1>, vector<32x2xf32>
    %c0_4 = arith.constant 0 : index
    %c0_5 = arith.constant 0 : index
    %16 = vector.load %arg2[%c0_4, %c0_5] : memref<2x32xf32, #tpu.memory_space<vmem>>, vector<2x32xf32>
    %cst_6 = arith.constant dense<0.000000e+00> : vector<2x2xf32>
    %17 = tpu.matmul %16, %15, %cst_6 {dimension_numbers = #tpu.dot_dimension_numbers<[1], [0], [0], [1], [0, 0, 1, 1], [], []>} : vector<2x32xf32>, vector<32x2xf32>, vector<2x2xf32> -> vector<2x2xf32>
    %cst_7 = arith.constant 0.000000e+00 : f32
    %18 = vector.broadcast %cst_7 : f32 to vector<2x2xf32>
    %19 = arith.maximumf %17, %18 : vector<2x2xf32>
    %c0_8 = arith.constant 0 : index
    %c0_9 = arith.constant 0 : index
    %20 = vector.load %arg3[%c0_8, %c0_9] : memref<32x2xf32, #tpu.memory_space<vmem>>, vector<32x2xf32>
    %cst_10 = arith.constant dense<0.000000e+00> : vector<32x2xf32>
    %21 = tpu.matmul %20, %19, %cst_10 {dimension_numbers = #tpu.dot_dimension_numbers<[1], [0], [0], [1], [0, 0, 1, 1], [], []>} : vector<32x2xf32>, vector<2x2xf32>, vector<32x2xf32> -> vector<32x2xf32>
    %cst_11 = arith.constant dense<0.000000e+00> : vector<32xf32>
    %22 = vector.multi_reduction <add>, %21, %cst_11 [1] : vector<32x2xf32> to vector<32xf32>
    %23 = vector.shape_cast %22 : vector<32xf32> to vector<32x1xf32>
    %24 = arith.negf %23 : vector<32x1xf32>
    %25 = math.exp %24 : vector<32x1xf32>
    %cst_12 = arith.constant 1.000000e+00 : f32
    %26 = vector.broadcast %cst_12 : f32 to vector<32x1xf32>
    %27 = arith.addf %26, %25 : vector<32x1xf32>
    %28 = arith.divf %26, %27 : vector<32x1xf32>
    %29 = vector.broadcast %28 : vector<32x1xf32> to vector<32x256xf32>
    %30 = arith.mulf %1, %29 : vector<32x256xf32>
    %cst_13 = arith.constant dense<0.000000e+00> : vector<256xf32>
    %31 = vector.multi_reduction <add>, %30, %cst_13 [0] : vector<32x256xf32> to vector<256xf32>
    %32 = vector.shape_cast %31 : vector<256xf32> to vector<1x256xf32>
    %cst_14 = arith.constant 3.200000e+01 : f32
    %33 = vector.broadcast %cst_14 : f32 to vector<1x256xf32>
    %34 = arith.divf %32, %33 : vector<1x256xf32>
    %cst_15 = arith.constant dense<0xFF800000> : vector<256xf32>
    %35 = vector.multi_reduction <maximumf>, %30, %cst_15 [0] : vector<32x256xf32> to vector<256xf32>
    %36 = vector.shape_cast %35 : vector<256xf32> to vector<1x256xf32>
    %cst_16 = arith.constant 0.000000e+00 : f32
    %37 = vector.broadcast %cst_16 : f32 to vector<2x358xf32>
    %c0_17 = arith.constant 0 : index
    %c0_18 = arith.constant 0 : index
    %38 = vector.load %arg6[%c0_17, %c0_18] : memref<2x358xf32, #tpu.memory_space<vmem>>, vector<2x358xf32>
    tpu.vector_store %arg6[%c0_17, %c0_18], %37 {strides = array<i32>} : memref<2x358xf32, #tpu.memory_space<vmem>>, vector<2x358xf32>,
    %c0_19 = arith.constant 0 : index
    %c51 = arith.constant 51 : index
    %39 = vector.load %arg6[%c0_19, %c51] : memref<2x358xf32, #tpu.memory_space<vmem>>, vector<1x256xf32>
    tpu.vector_store %arg6[%c0_19, %c51], %34 {strides = array<i32>} : memref<2x358xf32, #tpu.memory_space<vmem>>, vector<1x256xf32>,
    %c1 = arith.constant 1 : index
    %c51_20 = arith.constant 51 : index
    %40 = vector.load %arg6[%c1, %c51_20] : memref<2x358xf32, #tpu.memory_space<vmem>>, vector<1x256xf32>
    tpu.vector_store %arg6[%c1, %c51_20], %36 {strides = array<i32>} : memref<2x358xf32, #tpu.memory_space<vmem>>, vector<1x256xf32>,
    %41 = tpu.iota {dimensions = array<i32: 1>} : vector<1x256xi32>
    %c16_i32 = arith.constant 16 : i32
    %c0_i32_21 = arith.constant 0 : i32
    %42 = arith.cmpi eq, %c16_i32, %c0_i32_21 : i32
    %c1_i32 = arith.constant 1 : i32
    %43 = arith.select %42, %c1_i32, %c16_i32 : i32
    %44 = vector.broadcast %43 : i32 to vector<1x256xi32>
    %45 = arith.remsi %41, %44 : vector<1x256xi32>
    %c0_i32_22 = arith.constant 0 : i32
    %46 = vector.broadcast %c0_i32_22 : i32 to vector<1x256xi32>
    %47 = arith.cmpi ne, %45, %46 : vector<1x256xi32>
    %c0_i32_23 = arith.constant 0 : i32
    %48 = vector.broadcast %c0_i32_23 : i32 to vector<1x256xi32>
    %49 = arith.cmpi slt, %45, %48 : vector<1x256xi32>
    %c0_i32_24 = arith.constant 0 : i32
    %50 = arith.cmpi slt, %43, %c0_i32_24 : i32
    %51 = vector.broadcast %50 : i1 to vector<1x256xi1>
    %52 = vector.broadcast %51 : vector<1x256xi1> to vector<1x256xi1>
    %53 = arith.xori %49, %52 : vector<1x256xi1>
    %54 = arith.andi %53, %47 : vector<1x256xi1>
    %55 = vector.broadcast %43 : i32 to vector<1x256xi32>
    %56 = arith.addi %45, %55 : vector<1x256xi32>
    %57 = arith.select %54, %56, %45 : vector<1x256xi1>, vector<1x256xi32>
    %cst_25 = arith.constant 0.000000e+00 : f32
    %58 = vector.broadcast %cst_25 : f32 to vector<1x256xf32>
    %c-3_i32 = arith.constant -3 : i32
    %59 = vector.broadcast %c-3_i32 : i32 to vector<1x256xi32>
    %60 = arith.addi %57, %59 : vector<1x256xi32>
    %c0_i32_26 = arith.constant 0 : i32
    %61 = vector.broadcast %c0_i32_26 : i32 to vector<1x256xi32>
    %62 = arith.cmpi sge, %60, %61 : vector<1x256xi32>
    %c16_i32_27 = arith.constant 16 : i32
    %63 = vector.broadcast %c16_i32_27 : i32 to vector<1x256xi32>
    %64 = arith.cmpi slt, %60, %63 : vector<1x256xi32>
    %65 = arith.andi %62, %64 : vector<1x256xi1>
    %cst_28 = arith.constant 0.000000e+00 : f32
    %66 = vector.broadcast %cst_28 : f32 to vector<1x256xf32>
    %c0_29 = arith.constant 0 : index
    %67 = memref.load %arg4[%c0_29] : memref<98xf32, #tpu.memory_space<smem>>
    %c0_30 = arith.constant 0 : index
    %c0_31 = arith.constant 0 : index
    %68 = vector.load %arg6[%c0_30, %c0_31] : memref<2x358xf32, #tpu.memory_space<vmem>>, vector<1x256xf32>
    %69 = vector.broadcast %67 : f32 to vector<1x256xf32>
    %70 = arith.mulf %68, %69 : vector<1x256xf32>
    %71 = arith.addf %66, %70 : vector<1x256xf32>
    %c7 = arith.constant 7 : index
    %72 = memref.load %arg4[%c7] : memref<98xf32, #tpu.memory_space<smem>>
    %c0_32 = arith.constant 0 : index
    %c16 = arith.constant 16 : index
    %73 = vector.load %arg6[%c0_32, %c16] : memref<2x358xf32, #tpu.memory_space<vmem>>, vector<1x256xf32>
    %74 = vector.broadcast %72 : f32 to vector<1x256xf32>
    %75 = arith.mulf %73, %74 : vector<1x256xf32>
    %76 = arith.addf %71, %75 : vector<1x256xf32>
    %c14 = arith.constant 14 : index
    %77 = memref.load %arg4[%c14] : memref<98xf32, #tpu.memory_space<smem>>
    %c0_33 = arith.constant 0 : index
    %c32 = arith.constant 32 : index
    %78 = vector.load %arg6[%c0_33, %c32] : memref<2x358xf32, #tpu.memory_space<vmem>>, vector<1x256xf32>
    %79 = vector.broadcast %77 : f32 to vector<1x256xf32>
    %80 = arith.mulf %78, %79 : vector<1x256xf32>
    %81 = arith.addf %76, %80 : vector<1x256xf32>
    %c21 = arith.constant 21 : index
    %82 = memref.load %arg4[%c21] : memref<98xf32, #tpu.memory_space<smem>>
    %c0_34 = arith.constant 0 : index
    %c48 = arith.constant 48 : index
    %83 = vector.load %arg6[%c0_34, %c48] : memref<2x358xf32, #tpu.memory_space<vmem>>, vector<1x256xf32>
    %84 = vector.broadcast %82 : f32 to vector<1x256xf32>
    %85 = arith.mulf %83, %84 : vector<1x256xf32>
    %86 = arith.addf %81, %85 : vector<1x256xf32>
    %c28 = arith.constant 28 : index
    %87 = memref.load %arg4[%c28] : memref<98xf32, #tpu.memory_space<smem>>
    %c0_35 = arith.constant 0 : index
    %c64 = arith.constant 64 : index
    %88 = vector.load %arg6[%c0_35, %c64] : memref<2x358xf32, #tpu.memory_space<vmem>>, vector<1x256xf32>
    %89 = vector.broadcast %87 : f32 to vector<1x256xf32>
    %90 = arith.mulf %88, %89 : vector<1x256xf32>
    %91 = arith.addf %86, %90 : vector<1x256xf32>
    %c35 = arith.constant 35 : index
    %92 = memref.load %arg4[%c35] : memref<98xf32, #tpu.memory_space<smem>>
    %c0_36 = arith.constant 0 : index
    %c80 = arith.constant 80 : index
    %93 = vector.load %arg6[%c0_36, %c80] : memref<2x358xf32, #tpu.memory_space<vmem>>, vector<1x256xf32>
    %94 = vector.broadcast %92 : f32 to vector<1x256xf32>
    %95 = arith.mulf %93, %94 : vector<1x256xf32>
    %96 = arith.addf %91, %95 : vector<1x256xf32>
    %c42 = arith.constant 42 : index
    %97 = memref.load %arg4[%c42] : memref<98xf32, #tpu.memory_space<smem>>
    %c0_37 = arith.constant 0 : index
    %c96 = arith.constant 96 : index
    %98 = vector.load %arg6[%c0_37, %c96] : memref<2x358xf32, #tpu.memory_space<vmem>>, vector<1x256xf32>
    %99 = vector.broadcast %97 : f32 to vector<1x256xf32>
    %100 = arith.mulf %98, %99 : vector<1x256xf32>
    %101 = arith.addf %96, %100 : vector<1x256xf32>
    %c49 = arith.constant 49 : index
    %102 = memref.load %arg4[%c49] : memref<98xf32, #tpu.memory_space<smem>>
    %c1_38 = arith.constant 1 : index
    %c0_39 = arith.constant 0 : index
    %103 = vector.load %arg6[%c1_38, %c0_39] : memref<2x358xf32, #tpu.memory_space<vmem>>, vector<1x256xf32>
    %104 = vector.broadcast %102 : f32 to vector<1x256xf32>
    %105 = arith.mulf %103, %104 : vector<1x256xf32>
    %106 = arith.addf %101, %105 : vector<1x256xf32>
    %c56 = arith.constant 56 : index
    %107 = memref.load %arg4[%c56] : memref<98xf32, #tpu.memory_space<smem>>
    %c1_40 = arith.constant 1 : index
    %c16_41 = arith.constant 16 : index
    %108 = vector.load %arg6[%c1_40, %c16_41] : memref<2x358xf32, #tpu.memory_space<vmem>>, vector<1x256xf32>
    %109 = vector.broadcast %107 : f32 to vector<1x256xf32>
    %110 = arith.mulf %108, %109 : vector<1x256xf32>
    %111 = arith.addf %106, %110 : vector<1x256xf32>
    %c63 = arith.constant 63 : index
    %112 = memref.load %arg4[%c63] : memref<98xf32, #tpu.memory_space<smem>>
    %c1_42 = arith.constant 1 : index
    %c32_43 = arith.constant 32 : index
    %113 = vector.load %arg6[%c1_42, %c32_43] : memref<2x358xf32, #tpu.memory_space<vmem>>, vector<1x256xf32>
    %114 = vector.broadcast %112 : f32 to vector<1x256xf32>
    %115 = arith.mulf %113, %114 : vector<1x256xf32>
    %116 = arith.addf %111, %115 : vector<1x256xf32>
    %c70 = arith.constant 70 : index
    %117 = memref.load %arg4[%c70] : memref<98xf32, #tpu.memory_space<smem>>
    %c1_44 = arith.constant 1 : index
    %c48_45 = arith.constant 48 : index
    %118 = vector.load %arg6[%c1_44, %c48_45] : memref<2x358xf32, #tpu.memory_space<vmem>>, vector<1x256xf32>
    %119 = vector.broadcast %117 : f32 to vector<1x256xf32>
    %120 = arith.mulf %118, %119 : vector<1x256xf32>
    %121 = arith.addf %116, %120 : vector<1x256xf32>
    %c77 = arith.constant 77 : index
    %122 = memref.load %arg4[%c77] : memref<98xf32, #tpu.memory_space<smem>>
    %c1_46 = arith.constant 1 : index
    %c64_47 = arith.constant 64 : index
    %123 = vector.load %arg6[%c1_46, %c64_47] : memref<2x358xf32, #tpu.memory_space<vmem>>, vector<1x256xf32>
    %124 = vector.broadcast %122 : f32 to vector<1x256xf32>
    %125 = arith.mulf %123, %124 : vector<1x256xf32>
    %126 = arith.addf %121, %125 : vector<1x256xf32>
    %c84 = arith.constant 84 : index
    %127 = memref.load %arg4[%c84] : memref<98xf32, #tpu.memory_space<smem>>
    %c1_48 = arith.constant 1 : index
    %c80_49 = arith.constant 80 : index
    %128 = vector.load %arg6[%c1_48, %c80_49] : memref<2x358xf32, #tpu.memory_space<vmem>>, vector<1x256xf32>
    %129 = vector.broadcast %127 : f32 to vector<1x256xf32>
    %130 = arith.mulf %128, %129 : vector<1x256xf32>
    %131 = arith.addf %126, %130 : vector<1x256xf32>
    %c91 = arith.constant 91 : index
    %132 = memref.load %arg4[%c91] : memref<98xf32, #tpu.memory_space<smem>>
    %c1_50 = arith.constant 1 : index
    %c96_51 = arith.constant 96 : index
    %133 = vector.load %arg6[%c1_50, %c96_51] : memref<2x358xf32, #tpu.memory_space<vmem>>, vector<1x256xf32>
    %134 = vector.broadcast %132 : f32 to vector<1x256xf32>
    %135 = arith.mulf %133, %134 : vector<1x256xf32>
    %136 = arith.addf %131, %135 : vector<1x256xf32>
    %cst_52 = arith.constant 0.000000e+00 : f32
    %137 = vector.broadcast %cst_52 : f32 to vector<1x256xf32>
    %138 = arith.select %65, %136, %137 : vector<1x256xi1>, vector<1x256xf32>
    %139 = arith.addf %58, %138 : vector<1x256xf32>
    %c-2_i32 = arith.constant -2 : i32
    %140 = vector.broadcast %c-2_i32 : i32 to vector<1x256xi32>
    %141 = arith.addi %57, %140 : vector<1x256xi32>
    %c0_i32_53 = arith.constant 0 : i32
    %142 = vector.broadcast %c0_i32_53 : i32 to vector<1x256xi32>
    %143 = arith.cmpi sge, %141, %142 : vector<1x256xi32>
    %c16_i32_54 = arith.constant 16 : i32
    %144 = vector.broadcast %c16_i32_54 : i32 to vector<1x256xi32>
    %145 = arith.cmpi slt, %141, %144 : vector<1x256xi32>
    %146 = arith.andi %143, %145 : vector<1x256xi1>
    %cst_55 = arith.constant 0.000000e+00 : f32
    %147 = vector.broadcast %cst_55 : f32 to vector<1x256xf32>
    %c1_56 = arith.constant 1 : index
    %148 = memref.load %arg4[%c1_56] : memref<98xf32, #tpu.memory_space<smem>>
    %c0_57 = arith.constant 0 : index
    %c1_58 = arith.constant 1 : index
    %149 = vector.load %arg6[%c0_57, %c1_58] : memref<2x358xf32, #tpu.memory_space<vmem>>, vector<1x256xf32>
    %150 = vector.broadcast %148 : f32 to vector<1x256xf32>
    %151 = arith.mulf %149, %150 : vector<1x256xf32>
    %152 = arith.addf %147, %151 : vector<1x256xf32>
    %c8 = arith.constant 8 : index
    %153 = memref.load %arg4[%c8] : memref<98xf32, #tpu.memory_space<smem>>
    %c0_59 = arith.constant 0 : index
    %c17 = arith.constant 17 : index
    %154 = vector.load %arg6[%c0_59, %c17] : memref<2x358xf32, #tpu.memory_space<vmem>>, vector<1x256xf32>
    %155 = vector.broadcast %153 : f32 to vector<1x256xf32>
    %156 = arith.mulf %154, %155 : vector<1x256xf32>
    %157 = arith.addf %152, %156 : vector<1x256xf32>
    %c15 = arith.constant 15 : index
    %158 = memref.load %arg4[%c15] : memref<98xf32, #tpu.memory_space<smem>>
    %c0_60 = arith.constant 0 : index
    %c33 = arith.constant 33 : index
    %159 = vector.load %arg6[%c0_60, %c33] : memref<2x358xf32, #tpu.memory_space<vmem>>, vector<1x256xf32>
    %160 = vector.broadcast %158 : f32 to vector<1x256xf32>
    %161 = arith.mulf %159, %160 : vector<1x256xf32>
    %162 = arith.addf %157, %161 : vector<1x256xf32>
    %c22 = arith.constant 22 : index
    %163 = memref.load %arg4[%c22] : memref<98xf32, #tpu.memory_space<smem>>
    %c0_61 = arith.constant 0 : index
    %c49_62 = arith.constant 49 : index
    %164 = vector.load %arg6[%c0_61, %c49_62] : memref<2x358xf32, #tpu.memory_space<vmem>>, vector<1x256xf32>
    %165 = vector.broadcast %163 : f32 to vector<1x256xf32>
    %166 = arith.mulf %164, %165 : vector<1x256xf32>
    %167 = arith.addf %162, %166 : vector<1x256xf32>
    %c29 = arith.constant 29 : index
    %168 = memref.load %arg4[%c29] : memref<98xf32, #tpu.memory_space<smem>>
    %c0_63 = arith.constant 0 : index
    %c65 = arith.constant 65 : index
    %169 = vector.load %arg6[%c0_63, %c65] : memref<2x358xf32, #tpu.memory_space<vmem>>, vector<1x256xf32>
    %170 = vector.broadcast %168 : f32 to vector<1x256xf32>
    %171 = arith.mulf %169, %170 : vector<1x256xf32>
    %172 = arith.addf %167, %171 : vector<1x256xf32>
    %c36 = arith.constant 36 : index
    %173 = memref.load %arg4[%c36] : memref<98xf32, #tpu.memory_space<smem>>
    %c0_64 = arith.constant 0 : index
    %c81 = arith.constant 81 : index
    %174 = vector.load %arg6[%c0_64, %c81] : memref<2x358xf32, #tpu.memory_space<vmem>>, vector<1x256xf32>
    %175 = vector.broadcast %173 : f32 to vector<1x256xf32>
    %176 = arith.mulf %174, %175 : vector<1x256xf32>
    %177 = arith.addf %172, %176 : vector<1x256xf32>
    %c43 = arith.constant 43 : index
    %178 = memref.load %arg4[%c43] : memref<98xf32, #tpu.memory_space<smem>>
    %c0_65 = arith.constant 0 : index
    %c97 = arith.constant 97 : index
    %179 = vector.load %arg6[%c0_65, %c97] : memref<2x358xf32, #tpu.memory_space<vmem>>, vector<1x256xf32>
    %180 = vector.broadcast %178 : f32 to vector<1x256xf32>
    %181 = arith.mulf %179, %180 : vector<1x256xf32>
    %182 = arith.addf %177, %181 : vector<1x256xf32>
    %c50 = arith.constant 50 : index
    %183 = memref.load %arg4[%c50] : memref<98xf32, #tpu.memory_space<smem>>
    %c1_66 = arith.constant 1 : index
    %c1_67 = arith.constant 1 : index
    %184 = vector.load %arg6[%c1_66, %c1_67] : memref<2x358xf32, #tpu.memory_space<vmem>>, vector<1x256xf32>
    %185 = vector.broadcast %183 : f32 to vector<1x256xf32>
    %186 = arith.mulf %184, %185 : vector<1x256xf32>
    %187 = arith.addf %182, %186 : vector<1x256xf32>
    %c57 = arith.constant 57 : index
    %188 = memref.load %arg4[%c57] : memref<98xf32, #tpu.memory_space<smem>>
    %c1_68 = arith.constant 1 : index
    %c17_69 = arith.constant 17 : index
    %189 = vector.load %arg6[%c1_68, %c17_69] : memref<2x358xf32, #tpu.memory_space<vmem>>, vector<1x256xf32>
    %190 = vector.broadcast %188 : f32 to vector<1x256xf32>
    %191 = arith.mulf %189, %190 : vector<1x256xf32>
    %192 = arith.addf %187, %191 : vector<1x256xf32>
    %c64_70 = arith.constant 64 : index
    %193 = memref.load %arg4[%c64_70] : memref<98xf32, #tpu.memory_space<smem>>
    %c1_71 = arith.constant 1 : index
    %c33_72 = arith.constant 33 : index
    %194 = vector.load %arg6[%c1_71, %c33_72] : memref<2x358xf32, #tpu.memory_space<vmem>>, vector<1x256xf32>
    %195 = vector.broadcast %193 : f32 to vector<1x256xf32>
    %196 = arith.mulf %194, %195 : vector<1x256xf32>
    %197 = arith.addf %192, %196 : vector<1x256xf32>
    %c71 = arith.constant 71 : index
    %198 = memref.load %arg4[%c71] : memref<98xf32, #tpu.memory_space<smem>>
    %c1_73 = arith.constant 1 : index
    %c49_74 = arith.constant 49 : index
    %199 = vector.load %arg6[%c1_73, %c49_74] : memref<2x358xf32, #tpu.memory_space<vmem>>, vector<1x256xf32>
    %200 = vector.broadcast %198 : f32 to vector<1x256xf32>
    %201 = arith.mulf %199, %200 : vector<1x256xf32>
    %202 = arith.addf %197, %201 : vector<1x256xf32>
    %c78 = arith.constant 78 : index
    %203 = memref.load %arg4[%c78] : memref<98xf32, #tpu.memory_space<smem>>
    %c1_75 = arith.constant 1 : index
    %c65_76 = arith.constant 65 : index
    %204 = vector.load %arg6[%c1_75, %c65_76] : memref<2x358xf32, #tpu.memory_space<vmem>>, vector<1x256xf32>
    %205 = vector.broadcast %203 : f32 to vector<1x256xf32>
    %206 = arith.mulf %204, %205 : vector<1x256xf32>
    %207 = arith.addf %202, %206 : vector<1x256xf32>
    %c85 = arith.constant 85 : index
    %208 = memref.load %arg4[%c85] : memref<98xf32, #tpu.memory_space<smem>>
    %c1_77 = arith.constant 1 : index
    %c81_78 = arith.constant 81 : index
    %209 = vector.load %arg6[%c1_77, %c81_78] : memref<2x358xf32, #tpu.memory_space<vmem>>, vector<1x256xf32>
    %210 = vector.broadcast %208 : f32 to vector<1x256xf32>
    %211 = arith.mulf %209, %210 : vector<1x256xf32>
    %212 = arith.addf %207, %211 : vector<1x256xf32>
    %c92 = arith.constant 92 : index
    %213 = memref.load %arg4[%c92] : memref<98xf32, #tpu.memory_space<smem>>
    %c1_79 = arith.constant 1 : index
    %c97_80 = arith.constant 97 : index
    %214 = vector.load %arg6[%c1_79, %c97_80] : memref<2x358xf32, #tpu.memory_space<vmem>>, vector<1x256xf32>
    %215 = vector.broadcast %213 : f32 to vector<1x256xf32>
    %216 = arith.mulf %214, %215 : vector<1x256xf32>
    %217 = arith.addf %212, %216 : vector<1x256xf32>
    %cst_81 = arith.constant 0.000000e+00 : f32
    %218 = vector.broadcast %cst_81 : f32 to vector<1x256xf32>
    %219 = arith.select %146, %217, %218 : vector<1x256xi1>, vector<1x256xf32>
    %220 = arith.addf %139, %219 : vector<1x256xf32>
    %c-1_i32 = arith.constant -1 : i32
    %221 = vector.broadcast %c-1_i32 : i32 to vector<1x256xi32>
    %222 = arith.addi %57, %221 : vector<1x256xi32>
    %c0_i32_82 = arith.constant 0 : i32
    %223 = vector.broadcast %c0_i32_82 : i32 to vector<1x256xi32>
    %224 = arith.cmpi sge, %222, %223 : vector<1x256xi32>
    %c16_i32_83 = arith.constant 16 : i32
    %225 = vector.broadcast %c16_i32_83 : i32 to vector<1x256xi32>
    %226 = arith.cmpi slt, %222, %225 : vector<1x256xi32>
    %227 = arith.andi %224, %226 : vector<1x256xi1>
    %cst_84 = arith.constant 0.000000e+00 : f32
    %228 = vector.broadcast %cst_84 : f32 to vector<1x256xf32>
    %c2 = arith.constant 2 : index
    %229 = memref.load %arg4[%c2] : memref<98xf32, #tpu.memory_space<smem>>
    %c0_85 = arith.constant 0 : index
    %c2_86 = arith.constant 2 : index
    %230 = vector.load %arg6[%c0_85, %c2_86] : memref<2x358xf32, #tpu.memory_space<vmem>>, vector<1x256xf32>
    %231 = vector.broadcast %229 : f32 to vector<1x256xf32>
    %232 = arith.mulf %230, %231 : vector<1x256xf32>
    %233 = arith.addf %228, %232 : vector<1x256xf32>
    %c9 = arith.constant 9 : index
    %234 = memref.load %arg4[%c9] : memref<98xf32, #tpu.memory_space<smem>>
    %c0_87 = arith.constant 0 : index
    %c18 = arith.constant 18 : index
    %235 = vector.load %arg6[%c0_87, %c18] : memref<2x358xf32, #tpu.memory_space<vmem>>, vector<1x256xf32>
    %236 = vector.broadcast %234 : f32 to vector<1x256xf32>
    %237 = arith.mulf %235, %236 : vector<1x256xf32>
    %238 = arith.addf %233, %237 : vector<1x256xf32>
    %c16_88 = arith.constant 16 : index
    %239 = memref.load %arg4[%c16_88] : memref<98xf32, #tpu.memory_space<smem>>
    %c0_89 = arith.constant 0 : index
    %c34 = arith.constant 34 : index
    %240 = vector.load %arg6[%c0_89, %c34] : memref<2x358xf32, #tpu.memory_space<vmem>>, vector<1x256xf32>
    %241 = vector.broadcast %239 : f32 to vector<1x256xf32>
    %242 = arith.mulf %240, %241 : vector<1x256xf32>
    %243 = arith.addf %238, %242 : vector<1x256xf32>
    %c23 = arith.constant 23 : index
    %244 = memref.load %arg4[%c23] : memref<98xf32, #tpu.memory_space<smem>>
    %c0_90 = arith.constant 0 : index
    %c50_91 = arith.constant 50 : index
    %245 = vector.load %arg6[%c0_90, %c50_91] : memref<2x358xf32, #tpu.memory_space<vmem>>, vector<1x256xf32>
    %246 = vector.broadcast %244 : f32 to vector<1x256xf32>
    %247 = arith.mulf %245, %246 : vector<1x256xf32>
    %248 = arith.addf %243, %247 : vector<1x256xf32>
    %c30 = arith.constant 30 : index
    %249 = memref.load %arg4[%c30] : memref<98xf32, #tpu.memory_space<smem>>
    %c0_92 = arith.constant 0 : index
    %c66 = arith.constant 66 : index
    %250 = vector.load %arg6[%c0_92, %c66] : memref<2x358xf32, #tpu.memory_space<vmem>>, vector<1x256xf32>
    %251 = vector.broadcast %249 : f32 to vector<1x256xf32>
    %252 = arith.mulf %250, %251 : vector<1x256xf32>
    %253 = arith.addf %248, %252 : vector<1x256xf32>
    %c37 = arith.constant 37 : index
    %254 = memref.load %arg4[%c37] : memref<98xf32, #tpu.memory_space<smem>>
    %c0_93 = arith.constant 0 : index
    %c82 = arith.constant 82 : index
    %255 = vector.load %arg6[%c0_93, %c82] : memref<2x358xf32, #tpu.memory_space<vmem>>, vector<1x256xf32>
    %256 = vector.broadcast %254 : f32 to vector<1x256xf32>
    %257 = arith.mulf %255, %256 : vector<1x256xf32>
    %258 = arith.addf %253, %257 : vector<1x256xf32>
    %c44 = arith.constant 44 : index
    %259 = memref.load %arg4[%c44] : memref<98xf32, #tpu.memory_space<smem>>
    %c0_94 = arith.constant 0 : index
    %c98 = arith.constant 98 : index
    %260 = vector.load %arg6[%c0_94, %c98] : memref<2x358xf32, #tpu.memory_space<vmem>>, vector<1x256xf32>
    %261 = vector.broadcast %259 : f32 to vector<1x256xf32>
    %262 = arith.mulf %260, %261 : vector<1x256xf32>
    %263 = arith.addf %258, %262 : vector<1x256xf32>
    %c51_95 = arith.constant 51 : index
    %264 = memref.load %arg4[%c51_95] : memref<98xf32, #tpu.memory_space<smem>>
    %c1_96 = arith.constant 1 : index
    %c2_97 = arith.constant 2 : index
    %265 = vector.load %arg6[%c1_96, %c2_97] : memref<2x358xf32, #tpu.memory_space<vmem>>, vector<1x256xf32>
    %266 = vector.broadcast %264 : f32 to vector<1x256xf32>
    %267 = arith.mulf %265, %266 : vector<1x256xf32>
    %268 = arith.addf %263, %267 : vector<1x256xf32>
    %c58 = arith.constant 58 : index
    %269 = memref.load %arg4[%c58] : memref<98xf32, #tpu.memory_space<smem>>
    %c1_98 = arith.constant 1 : index
    %c18_99 = arith.constant 18 : index
    %270 = vector.load %arg6[%c1_98, %c18_99] : memref<2x358xf32, #tpu.memory_space<vmem>>, vector<1x256xf32>
    %271 = vector.broadcast %269 : f32 to vector<1x256xf32>
    %272 = arith.mulf %270, %271 : vector<1x256xf32>
    %273 = arith.addf %268, %272 : vector<1x256xf32>
    %c65_100 = arith.constant 65 : index
    %274 = memref.load %arg4[%c65_100] : memref<98xf32, #tpu.memory_space<smem>>
    %c1_101 = arith.constant 1 : index
    %c34_102 = arith.constant 34 : index
    %275 = vector.load %arg6[%c1_101, %c34_102] : memref<2x358xf32, #tpu.memory_space<vmem>>, vector<1x256xf32>
    %276 = vector.broadcast %274 : f32 to vector<1x256xf32>
    %277 = arith.mulf %275, %276 : vector<1x256xf32>
    %278 = arith.addf %273, %277 : vector<1x256xf32>
    %c72 = arith.constant 72 : index
    %279 = memref.load %arg4[%c72] : memref<98xf32, #tpu.memory_space<smem>>
    %c1_103 = arith.constant 1 : index
    %c50_104 = arith.constant 50 : index
    %280 = vector.load %arg6[%c1_103, %c50_104] : memref<2x358xf32, #tpu.memory_space<vmem>>, vector<1x256xf32>
    %281 = vector.broadcast %279 : f32 to vector<1x256xf32>
    %282 = arith.mulf %280, %281 : vector<1x256xf32>
    %283 = arith.addf %278, %282 : vector<1x256xf32>
    %c79 = arith.constant 79 : index
    %284 = memref.load %arg4[%c79] : memref<98xf32, #tpu.memory_space<smem>>
    %c1_105 = arith.constant 1 : index
    %c66_106 = arith.constant 66 : index
    %285 = vector.load %arg6[%c1_105, %c66_106] : memref<2x358xf32, #tpu.memory_space<vmem>>, vector<1x256xf32>
    %286 = vector.broadcast %284 : f32 to vector<1x256xf32>
    %287 = arith.mulf %285, %286 : vector<1x256xf32>
    %288 = arith.addf %283, %287 : vector<1x256xf32>
    %c86 = arith.constant 86 : index
    %289 = memref.load %arg4[%c86] : memref<98xf32, #tpu.memory_space<smem>>
    %c1_107 = arith.constant 1 : index
    %c82_108 = arith.constant 82 : index
    %290 = vector.load %arg6[%c1_107, %c82_108] : memref<2x358xf32, #tpu.memory_space<vmem>>, vector<1x256xf32>
    %291 = vector.broadcast %289 : f32 to vector<1x256xf32>
    %292 = arith.mulf %290, %291 : vector<1x256xf32>
    %293 = arith.addf %288, %292 : vector<1x256xf32>
    %c93 = arith.constant 93 : index
    %294 = memref.load %arg4[%c93] : memref<98xf32, #tpu.memory_space<smem>>
    %c1_109 = arith.constant 1 : index
    %c98_110 = arith.constant 98 : index
    %295 = vector.load %arg6[%c1_109, %c98_110] : memref<2x358xf32, #tpu.memory_space<vmem>>, vector<1x256xf32>
    %296 = vector.broadcast %294 : f32 to vector<1x256xf32>
    %297 = arith.mulf %295, %296 : vector<1x256xf32>
    %298 = arith.addf %293, %297 : vector<1x256xf32>
    %cst_111 = arith.constant 0.000000e+00 : f32
    %299 = vector.broadcast %cst_111 : f32 to vector<1x256xf32>
    %300 = arith.select %227, %298, %299 : vector<1x256xi1>, vector<1x256xf32>
    %301 = arith.addf %220, %300 : vector<1x256xf32>
    %c0_i32_112 = arith.constant 0 : i32
    %302 = vector.broadcast %c0_i32_112 : i32 to vector<1x256xi32>
    %303 = arith.addi %57, %302 : vector<1x256xi32>
    %c0_i32_113 = arith.constant 0 : i32
    %304 = vector.broadcast %c0_i32_113 : i32 to vector<1x256xi32>
    %305 = arith.cmpi sge, %303, %304 : vector<1x256xi32>
    %c16_i32_114 = arith.constant 16 : i32
    %306 = vector.broadcast %c16_i32_114 : i32 to vector<1x256xi32>
    %307 = arith.cmpi slt, %303, %306 : vector<1x256xi32>
    %308 = arith.andi %305, %307 : vector<1x256xi1>
    %cst_115 = arith.constant 0.000000e+00 : f32
    %309 = vector.broadcast %cst_115 : f32 to vector<1x256xf32>
    %c3 = arith.constant 3 : index
    %310 = memref.load %arg4[%c3] : memref<98xf32, #tpu.memory_space<smem>>
    %c0_116 = arith.constant 0 : index
    %c3_117 = arith.constant 3 : index
    %311 = vector.load %arg6[%c0_116, %c3_117] : memref<2x358xf32, #tpu.memory_space<vmem>>, vector<1x256xf32>
    %312 = vector.broadcast %310 : f32 to vector<1x256xf32>
    %313 = arith.mulf %311, %312 : vector<1x256xf32>
    %314 = arith.addf %309, %313 : vector<1x256xf32>
    %c10 = arith.constant 10 : index
    %315 = memref.load %arg4[%c10] : memref<98xf32, #tpu.memory_space<smem>>
    %c0_118 = arith.constant 0 : index
    %c19 = arith.constant 19 : index
    %316 = vector.load %arg6[%c0_118, %c19] : memref<2x358xf32, #tpu.memory_space<vmem>>, vector<1x256xf32>
    %317 = vector.broadcast %315 : f32 to vector<1x256xf32>
    %318 = arith.mulf %316, %317 : vector<1x256xf32>
    %319 = arith.addf %314, %318 : vector<1x256xf32>
    %c17_119 = arith.constant 17 : index
    %320 = memref.load %arg4[%c17_119] : memref<98xf32, #tpu.memory_space<smem>>
    %c0_120 = arith.constant 0 : index
    %c35_121 = arith.constant 35 : index
    %321 = vector.load %arg6[%c0_120, %c35_121] : memref<2x358xf32, #tpu.memory_space<vmem>>, vector<1x256xf32>
    %322 = vector.broadcast %320 : f32 to vector<1x256xf32>
    %323 = arith.mulf %321, %322 : vector<1x256xf32>
    %324 = arith.addf %319, %323 : vector<1x256xf32>
    %c24 = arith.constant 24 : index
    %325 = memref.load %arg4[%c24] : memref<98xf32, #tpu.memory_space<smem>>
    %c0_122 = arith.constant 0 : index
    %c51_123 = arith.constant 51 : index
    %326 = vector.load %arg6[%c0_122, %c51_123] : memref<2x358xf32, #tpu.memory_space<vmem>>, vector<1x256xf32>
    %327 = vector.broadcast %325 : f32 to vector<1x256xf32>
    %328 = arith.mulf %326, %327 : vector<1x256xf32>
    %329 = arith.addf %324, %328 : vector<1x256xf32>
    %c31 = arith.constant 31 : index
    %330 = memref.load %arg4[%c31] : memref<98xf32, #tpu.memory_space<smem>>
    %c0_124 = arith.constant 0 : index
    %c67 = arith.constant 67 : index
    %331 = vector.load %arg6[%c0_124, %c67] : memref<2x358xf32, #tpu.memory_space<vmem>>, vector<1x256xf32>
    %332 = vector.broadcast %330 : f32 to vector<1x256xf32>
    %333 = arith.mulf %331, %332 : vector<1x256xf32>
    %334 = arith.addf %329, %333 : vector<1x256xf32>
    %c38 = arith.constant 38 : index
    %335 = memref.load %arg4[%c38] : memref<98xf32, #tpu.memory_space<smem>>
    %c0_125 = arith.constant 0 : index
    %c83 = arith.constant 83 : index
    %336 = vector.load %arg6[%c0_125, %c83] : memref<2x358xf32, #tpu.memory_space<vmem>>, vector<1x256xf32>
    %337 = vector.broadcast %335 : f32 to vector<1x256xf32>
    %338 = arith.mulf %336, %337 : vector<1x256xf32>
    %339 = arith.addf %334, %338 : vector<1x256xf32>
    %c45 = arith.constant 45 : index
    %340 = memref.load %arg4[%c45] : memref<98xf32, #tpu.memory_space<smem>>
    %c0_126 = arith.constant 0 : index
    %c99 = arith.constant 99 : index
    %341 = vector.load %arg6[%c0_126, %c99] : memref<2x358xf32, #tpu.memory_space<vmem>>, vector<1x256xf32>
    %342 = vector.broadcast %340 : f32 to vector<1x256xf32>
    %343 = arith.mulf %341, %342 : vector<1x256xf32>
    %344 = arith.addf %339, %343 : vector<1x256xf32>
    %c52 = arith.constant 52 : index
    %345 = memref.load %arg4[%c52] : memref<98xf32, #tpu.memory_space<smem>>
    %c1_127 = arith.constant 1 : index
    %c3_128 = arith.constant 3 : index
    %346 = vector.load %arg6[%c1_127, %c3_128] : memref<2x358xf32, #tpu.memory_space<vmem>>, vector<1x256xf32>
    %347 = vector.broadcast %345 : f32 to vector<1x256xf32>
    %348 = arith.mulf %346, %347 : vector<1x256xf32>
    %349 = arith.addf %344, %348 : vector<1x256xf32>
    %c59 = arith.constant 59 : index
    %350 = memref.load %arg4[%c59] : memref<98xf32, #tpu.memory_space<smem>>
    %c1_129 = arith.constant 1 : index
    %c19_130 = arith.constant 19 : index
    %351 = vector.load %arg6[%c1_129, %c19_130] : memref<2x358xf32, #tpu.memory_space<vmem>>, vector<1x256xf32>
    %352 = vector.broadcast %350 : f32 to vector<1x256xf32>
    %353 = arith.mulf %351, %352 : vector<1x256xf32>
    %354 = arith.addf %349, %353 : vector<1x256xf32>
    %c66_131 = arith.constant 66 : index
    %355 = memref.load %arg4[%c66_131] : memref<98xf32, #tpu.memory_space<smem>>
    %c1_132 = arith.constant 1 : index
    %c35_133 = arith.constant 35 : index
    %356 = vector.load %arg6[%c1_132, %c35_133] : memref<2x358xf32, #tpu.memory_space<vmem>>, vector<1x256xf32>
    %357 = vector.broadcast %355 : f32 to vector<1x256xf32>
    %358 = arith.mulf %356, %357 : vector<1x256xf32>
    %359 = arith.addf %354, %358 : vector<1x256xf32>
    %c73 = arith.constant 73 : index
    %360 = memref.load %arg4[%c73] : memref<98xf32, #tpu.memory_space<smem>>
    %c1_134 = arith.constant 1 : index
    %c51_135 = arith.constant 51 : index
    %361 = vector.load %arg6[%c1_134, %c51_135] : memref<2x358xf32, #tpu.memory_space<vmem>>, vector<1x256xf32>
    %362 = vector.broadcast %360 : f32 to vector<1x256xf32>
    %363 = arith.mulf %361, %362 : vector<1x256xf32>
    %364 = arith.addf %359, %363 : vector<1x256xf32>
    %c80_136 = arith.constant 80 : index
    %365 = memref.load %arg4[%c80_136] : memref<98xf32, #tpu.memory_space<smem>>
    %c1_137 = arith.constant 1 : index
    %c67_138 = arith.constant 67 : index
    %366 = vector.load %arg6[%c1_137, %c67_138] : memref<2x358xf32, #tpu.memory_space<vmem>>, vector<1x256xf32>
    %367 = vector.broadcast %365 : f32 to vector<1x256xf32>
    %368 = arith.mulf %366, %367 : vector<1x256xf32>
    %369 = arith.addf %364, %368 : vector<1x256xf32>
    %c87 = arith.constant 87 : index
    %370 = memref.load %arg4[%c87] : memref<98xf32, #tpu.memory_space<smem>>
    %c1_139 = arith.constant 1 : index
    %c83_140 = arith.constant 83 : index
    %371 = vector.load %arg6[%c1_139, %c83_140] : memref<2x358xf32, #tpu.memory_space<vmem>>, vector<1x256xf32>
    %372 = vector.broadcast %370 : f32 to vector<1x256xf32>
    %373 = arith.mulf %371, %372 : vector<1x256xf32>
    %374 = arith.addf %369, %373 : vector<1x256xf32>
    %c94 = arith.constant 94 : index
    %375 = memref.load %arg4[%c94] : memref<98xf32, #tpu.memory_space<smem>>
    %c1_141 = arith.constant 1 : index
    %c99_142 = arith.constant 99 : index
    %376 = vector.load %arg6[%c1_141, %c99_142] : memref<2x358xf32, #tpu.memory_space<vmem>>, vector<1x256xf32>
    %377 = vector.broadcast %375 : f32 to vector<1x256xf32>
    %378 = arith.mulf %376, %377 : vector<1x256xf32>
    %379 = arith.addf %374, %378 : vector<1x256xf32>
    %cst_143 = arith.constant 0.000000e+00 : f32
    %380 = vector.broadcast %cst_143 : f32 to vector<1x256xf32>
    %381 = arith.select %308, %379, %380 : vector<1x256xi1>, vector<1x256xf32>
    %382 = arith.addf %301, %381 : vector<1x256xf32>
    %c1_i32_144 = arith.constant 1 : i32
    %383 = vector.broadcast %c1_i32_144 : i32 to vector<1x256xi32>
    %384 = arith.addi %57, %383 : vector<1x256xi32>
    %c0_i32_145 = arith.constant 0 : i32
    %385 = vector.broadcast %c0_i32_145 : i32 to vector<1x256xi32>
    %386 = arith.cmpi sge, %384, %385 : vector<1x256xi32>
    %c16_i32_146 = arith.constant 16 : i32
    %387 = vector.broadcast %c16_i32_146 : i32 to vector<1x256xi32>
    %388 = arith.cmpi slt, %384, %387 : vector<1x256xi32>
    %389 = arith.andi %386, %388 : vector<1x256xi1>
    %cst_147 = arith.constant 0.000000e+00 : f32
    %390 = vector.broadcast %cst_147 : f32 to vector<1x256xf32>
    %c4 = arith.constant 4 : index
    %391 = memref.load %arg4[%c4] : memref<98xf32, #tpu.memory_space<smem>>
    %c0_148 = arith.constant 0 : index
    %c4_149 = arith.constant 4 : index
    %392 = vector.load %arg6[%c0_148, %c4_149] : memref<2x358xf32, #tpu.memory_space<vmem>>, vector<1x256xf32>
    %393 = vector.broadcast %391 : f32 to vector<1x256xf32>
    %394 = arith.mulf %392, %393 : vector<1x256xf32>
    %395 = arith.addf %390, %394 : vector<1x256xf32>
    %c11 = arith.constant 11 : index
    %396 = memref.load %arg4[%c11] : memref<98xf32, #tpu.memory_space<smem>>
    %c0_150 = arith.constant 0 : index
    %c20 = arith.constant 20 : index
    %397 = vector.load %arg6[%c0_150, %c20] : memref<2x358xf32, #tpu.memory_space<vmem>>, vector<1x256xf32>
    %398 = vector.broadcast %396 : f32 to vector<1x256xf32>
    %399 = arith.mulf %397, %398 : vector<1x256xf32>
    %400 = arith.addf %395, %399 : vector<1x256xf32>
    %c18_151 = arith.constant 18 : index
    %401 = memref.load %arg4[%c18_151] : memref<98xf32, #tpu.memory_space<smem>>
    %c0_152 = arith.constant 0 : index
    %c36_153 = arith.constant 36 : index
    %402 = vector.load %arg6[%c0_152, %c36_153] : memref<2x358xf32, #tpu.memory_space<vmem>>, vector<1x256xf32>
    %403 = vector.broadcast %401 : f32 to vector<1x256xf32>
    %404 = arith.mulf %402, %403 : vector<1x256xf32>
    %405 = arith.addf %400, %404 : vector<1x256xf32>
    %c25 = arith.constant 25 : index
    %406 = memref.load %arg4[%c25] : memref<98xf32, #tpu.memory_space<smem>>
    %c0_154 = arith.constant 0 : index
    %c52_155 = arith.constant 52 : index
    %407 = vector.load %arg6[%c0_154, %c52_155] : memref<2x358xf32, #tpu.memory_space<vmem>>, vector<1x256xf32>
    %408 = vector.broadcast %406 : f32 to vector<1x256xf32>
    %409 = arith.mulf %407, %408 : vector<1x256xf32>
    %410 = arith.addf %405, %409 : vector<1x256xf32>
    %c32_156 = arith.constant 32 : index
    %411 = memref.load %arg4[%c32_156] : memref<98xf32, #tpu.memory_space<smem>>
    %c0_157 = arith.constant 0 : index
    %c68 = arith.constant 68 : index
    %412 = vector.load %arg6[%c0_157, %c68] : memref<2x358xf32, #tpu.memory_space<vmem>>, vector<1x256xf32>
    %413 = vector.broadcast %411 : f32 to vector<1x256xf32>
    %414 = arith.mulf %412, %413 : vector<1x256xf32>
    %415 = arith.addf %410, %414 : vector<1x256xf32>
    %c39 = arith.constant 39 : index
    %416 = memref.load %arg4[%c39] : memref<98xf32, #tpu.memory_space<smem>>
    %c0_158 = arith.constant 0 : index
    %c84_159 = arith.constant 84 : index
    %417 = vector.load %arg6[%c0_158, %c84_159] : memref<2x358xf32, #tpu.memory_space<vmem>>, vector<1x256xf32>
    %418 = vector.broadcast %416 : f32 to vector<1x256xf32>
    %419 = arith.mulf %417, %418 : vector<1x256xf32>
    %420 = arith.addf %415, %419 : vector<1x256xf32>
    %c46 = arith.constant 46 : index
    %421 = memref.load %arg4[%c46] : memref<98xf32, #tpu.memory_space<smem>>
    %c0_160 = arith.constant 0 : index
    %c100 = arith.constant 100 : index
    %422 = vector.load %arg6[%c0_160, %c100] : memref<2x358xf32, #tpu.memory_space<vmem>>, vector<1x256xf32>
    %423 = vector.broadcast %421 : f32 to vector<1x256xf32>
    %424 = arith.mulf %422, %423 : vector<1x256xf32>
    %425 = arith.addf %420, %424 : vector<1x256xf32>
    %c53 = arith.constant 53 : index
    %426 = memref.load %arg4[%c53] : memref<98xf32, #tpu.memory_space<smem>>
    %c1_161 = arith.constant 1 : index
    %c4_162 = arith.constant 4 : index
    %427 = vector.load %arg6[%c1_161, %c4_162] : memref<2x358xf32, #tpu.memory_space<vmem>>, vector<1x256xf32>
    %428 = vector.broadcast %426 : f32 to vector<1x256xf32>
    %429 = arith.mulf %427, %428 : vector<1x256xf32>
    %430 = arith.addf %425, %429 : vector<1x256xf32>
    %c60 = arith.constant 60 : index
    %431 = memref.load %arg4[%c60] : memref<98xf32, #tpu.memory_space<smem>>
    %c1_163 = arith.constant 1 : index
    %c20_164 = arith.constant 20 : index
    %432 = vector.load %arg6[%c1_163, %c20_164] : memref<2x358xf32, #tpu.memory_space<vmem>>, vector<1x256xf32>
    %433 = vector.broadcast %431 : f32 to vector<1x256xf32>
    %434 = arith.mulf %432, %433 : vector<1x256xf32>
    %435 = arith.addf %430, %434 : vector<1x256xf32>
    %c67_165 = arith.constant 67 : index
    %436 = memref.load %arg4[%c67_165] : memref<98xf32, #tpu.memory_space<smem>>
    %c1_166 = arith.constant 1 : index
    %c36_167 = arith.constant 36 : index
    %437 = vector.load %arg6[%c1_166, %c36_167] : memref<2x358xf32, #tpu.memory_space<vmem>>, vector<1x256xf32>
    %438 = vector.broadcast %436 : f32 to vector<1x256xf32>
    %439 = arith.mulf %437, %438 : vector<1x256xf32>
    %440 = arith.addf %435, %439 : vector<1x256xf32>
    %c74 = arith.constant 74 : index
    %441 = memref.load %arg4[%c74] : memref<98xf32, #tpu.memory_space<smem>>
    %c1_168 = arith.constant 1 : index
    %c52_169 = arith.constant 52 : index
    %442 = vector.load %arg6[%c1_168, %c52_169] : memref<2x358xf32, #tpu.memory_space<vmem>>, vector<1x256xf32>
    %443 = vector.broadcast %441 : f32 to vector<1x256xf32>
    %444 = arith.mulf %442, %443 : vector<1x256xf32>
    %445 = arith.addf %440, %444 : vector<1x256xf32>
    %c81_170 = arith.constant 81 : index
    %446 = memref.load %arg4[%c81_170] : memref<98xf32, #tpu.memory_space<smem>>
    %c1_171 = arith.constant 1 : index
    %c68_172 = arith.constant 68 : index
    %447 = vector.load %arg6[%c1_171, %c68_172] : memref<2x358xf32, #tpu.memory_space<vmem>>, vector<1x256xf32>
    %448 = vector.broadcast %446 : f32 to vector<1x256xf32>
    %449 = arith.mulf %447, %448 : vector<1x256xf32>
    %450 = arith.addf %445, %449 : vector<1x256xf32>
    %c88 = arith.constant 88 : index
    %451 = memref.load %arg4[%c88] : memref<98xf32, #tpu.memory_space<smem>>
    %c1_173 = arith.constant 1 : index
    %c84_174 = arith.constant 84 : index
    %452 = vector.load %arg6[%c1_173, %c84_174] : memref<2x358xf32, #tpu.memory_space<vmem>>, vector<1x256xf32>
    %453 = vector.broadcast %451 : f32 to vector<1x256xf32>
    %454 = arith.mulf %452, %453 : vector<1x256xf32>
    %455 = arith.addf %450, %454 : vector<1x256xf32>
    %c95 = arith.constant 95 : index
    %456 = memref.load %arg4[%c95] : memref<98xf32, #tpu.memory_space<smem>>
    %c1_175 = arith.constant 1 : index
    %c100_176 = arith.constant 100 : index
    %457 = vector.load %arg6[%c1_175, %c100_176] : memref<2x358xf32, #tpu.memory_space<vmem>>, vector<1x256xf32>
    %458 = vector.broadcast %456 : f32 to vector<1x256xf32>
    %459 = arith.mulf %457, %458 : vector<1x256xf32>
    %460 = arith.addf %455, %459 : vector<1x256xf32>
    %cst_177 = arith.constant 0.000000e+00 : f32
    %461 = vector.broadcast %cst_177 : f32 to vector<1x256xf32>
    %462 = arith.select %389, %460, %461 : vector<1x256xi1>, vector<1x256xf32>
    %463 = arith.addf %382, %462 : vector<1x256xf32>
    %c2_i32 = arith.constant 2 : i32
    %464 = vector.broadcast %c2_i32 : i32 to vector<1x256xi32>
    %465 = arith.addi %57, %464 : vector<1x256xi32>
    %c0_i32_178 = arith.constant 0 : i32
    %466 = vector.broadcast %c0_i32_178 : i32 to vector<1x256xi32>
    %467 = arith.cmpi sge, %465, %466 : vector<1x256xi32>
    %c16_i32_179 = arith.constant 16 : i32
    %468 = vector.broadcast %c16_i32_179 : i32 to vector<1x256xi32>
    %469 = arith.cmpi slt, %465, %468 : vector<1x256xi32>
    %470 = arith.andi %467, %469 : vector<1x256xi1>
    %cst_180 = arith.constant 0.000000e+00 : f32
    %471 = vector.broadcast %cst_180 : f32 to vector<1x256xf32>
    %c5 = arith.constant 5 : index
    %472 = memref.load %arg4[%c5] : memref<98xf32, #tpu.memory_space<smem>>
    %c0_181 = arith.constant 0 : index
    %c5_182 = arith.constant 5 : index
    %473 = vector.load %arg6[%c0_181, %c5_182] : memref<2x358xf32, #tpu.memory_space<vmem>>, vector<1x256xf32>
    %474 = vector.broadcast %472 : f32 to vector<1x256xf32>
    %475 = arith.mulf %473, %474 : vector<1x256xf32>
    %476 = arith.addf %471, %475 : vector<1x256xf32>
    %c12 = arith.constant 12 : index
    %477 = memref.load %arg4[%c12] : memref<98xf32, #tpu.memory_space<smem>>
    %c0_183 = arith.constant 0 : index
    %c21_184 = arith.constant 21 : index
    %478 = vector.load %arg6[%c0_183, %c21_184] : memref<2x358xf32, #tpu.memory_space<vmem>>, vector<1x256xf32>
    %479 = vector.broadcast %477 : f32 to vector<1x256xf32>
    %480 = arith.mulf %478, %479 : vector<1x256xf32>
    %481 = arith.addf %476, %480 : vector<1x256xf32>
    %c19_185 = arith.constant 19 : index
    %482 = memref.load %arg4[%c19_185] : memref<98xf32, #tpu.memory_space<smem>>
    %c0_186 = arith.constant 0 : index
    %c37_187 = arith.constant 37 : index
    %483 = vector.load %arg6[%c0_186, %c37_187] : memref<2x358xf32, #tpu.memory_space<vmem>>, vector<1x256xf32>
    %484 = vector.broadcast %482 : f32 to vector<1x256xf32>
    %485 = arith.mulf %483, %484 : vector<1x256xf32>
    %486 = arith.addf %481, %485 : vector<1x256xf32>
    %c26 = arith.constant 26 : index
    %487 = memref.load %arg4[%c26] : memref<98xf32, #tpu.memory_space<smem>>
    %c0_188 = arith.constant 0 : index
    %c53_189 = arith.constant 53 : index
    %488 = vector.load %arg6[%c0_188, %c53_189] : memref<2x358xf32, #tpu.memory_space<vmem>>, vector<1x256xf32>
    %489 = vector.broadcast %487 : f32 to vector<1x256xf32>
    %490 = arith.mulf %488, %489 : vector<1x256xf32>
    %491 = arith.addf %486, %490 : vector<1x256xf32>
    %c33_190 = arith.constant 33 : index
    %492 = memref.load %arg4[%c33_190] : memref<98xf32, #tpu.memory_space<smem>>
    %c0_191 = arith.constant 0 : index
    %c69 = arith.constant 69 : index
    %493 = vector.load %arg6[%c0_191, %c69] : memref<2x358xf32, #tpu.memory_space<vmem>>, vector<1x256xf32>
    %494 = vector.broadcast %492 : f32 to vector<1x256xf32>
    %495 = arith.mulf %493, %494 : vector<1x256xf32>
    %496 = arith.addf %491, %495 : vector<1x256xf32>
    %c40 = arith.constant 40 : index
    %497 = memref.load %arg4[%c40] : memref<98xf32, #tpu.memory_space<smem>>
    %c0_192 = arith.constant 0 : index
    %c85_193 = arith.constant 85 : index
    %498 = vector.load %arg6[%c0_192, %c85_193] : memref<2x358xf32, #tpu.memory_space<vmem>>, vector<1x256xf32>
    %499 = vector.broadcast %497 : f32 to vector<1x256xf32>
    %500 = arith.mulf %498, %499 : vector<1x256xf32>
    %501 = arith.addf %496, %500 : vector<1x256xf32>
    %c47 = arith.constant 47 : index
    %502 = memref.load %arg4[%c47] : memref<98xf32, #tpu.memory_space<smem>>
    %c0_194 = arith.constant 0 : index
    %c101 = arith.constant 101 : index
    %503 = vector.load %arg6[%c0_194, %c101] : memref<2x358xf32, #tpu.memory_space<vmem>>, vector<1x256xf32>
    %504 = vector.broadcast %502 : f32 to vector<1x256xf32>
    %505 = arith.mulf %503, %504 : vector<1x256xf32>
    %506 = arith.addf %501, %505 : vector<1x256xf32>
    %c54 = arith.constant 54 : index
    %507 = memref.load %arg4[%c54] : memref<98xf32, #tpu.memory_space<smem>>
    %c1_195 = arith.constant 1 : index
    %c5_196 = arith.constant 5 : index
    %508 = vector.load %arg6[%c1_195, %c5_196] : memref<2x358xf32, #tpu.memory_space<vmem>>, vector<1x256xf32>
    %509 = vector.broadcast %507 : f32 to vector<1x256xf32>
    %510 = arith.mulf %508, %509 : vector<1x256xf32>
    %511 = arith.addf %506, %510 : vector<1x256xf32>
    %c61 = arith.constant 61 : index
    %512 = memref.load %arg4[%c61] : memref<98xf32, #tpu.memory_space<smem>>
    %c1_197 = arith.constant 1 : index
    %c21_198 = arith.constant 21 : index
    %513 = vector.load %arg6[%c1_197, %c21_198] : memref<2x358xf32, #tpu.memory_space<vmem>>, vector<1x256xf32>
    %514 = vector.broadcast %512 : f32 to vector<1x256xf32>
    %515 = arith.mulf %513, %514 : vector<1x256xf32>
    %516 = arith.addf %511, %515 : vector<1x256xf32>
    %c68_199 = arith.constant 68 : index
    %517 = memref.load %arg4[%c68_199] : memref<98xf32, #tpu.memory_space<smem>>
    %c1_200 = arith.constant 1 : index
    %c37_201 = arith.constant 37 : index
    %518 = vector.load %arg6[%c1_200, %c37_201] : memref<2x358xf32, #tpu.memory_space<vmem>>, vector<1x256xf32>
    %519 = vector.broadcast %517 : f32 to vector<1x256xf32>
    %520 = arith.mulf %518, %519 : vector<1x256xf32>
    %521 = arith.addf %516, %520 : vector<1x256xf32>
    %c75 = arith.constant 75 : index
    %522 = memref.load %arg4[%c75] : memref<98xf32, #tpu.memory_space<smem>>
    %c1_202 = arith.constant 1 : index
    %c53_203 = arith.constant 53 : index
    %523 = vector.load %arg6[%c1_202, %c53_203] : memref<2x358xf32, #tpu.memory_space<vmem>>, vector<1x256xf32>
    %524 = vector.broadcast %522 : f32 to vector<1x256xf32>
    %525 = arith.mulf %523, %524 : vector<1x256xf32>
    %526 = arith.addf %521, %525 : vector<1x256xf32>
    %c82_204 = arith.constant 82 : index
    %527 = memref.load %arg4[%c82_204] : memref<98xf32, #tpu.memory_space<smem>>
    %c1_205 = arith.constant 1 : index
    %c69_206 = arith.constant 69 : index
    %528 = vector.load %arg6[%c1_205, %c69_206] : memref<2x358xf32, #tpu.memory_space<vmem>>, vector<1x256xf32>
    %529 = vector.broadcast %527 : f32 to vector<1x256xf32>
    %530 = arith.mulf %528, %529 : vector<1x256xf32>
    %531 = arith.addf %526, %530 : vector<1x256xf32>
    %c89 = arith.constant 89 : index
    %532 = memref.load %arg4[%c89] : memref<98xf32, #tpu.memory_space<smem>>
    %c1_207 = arith.constant 1 : index
    %c85_208 = arith.constant 85 : index
    %533 = vector.load %arg6[%c1_207, %c85_208] : memref<2x358xf32, #tpu.memory_space<vmem>>, vector<1x256xf32>
    %534 = vector.broadcast %532 : f32 to vector<1x256xf32>
    %535 = arith.mulf %533, %534 : vector<1x256xf32>
    %536 = arith.addf %531, %535 : vector<1x256xf32>
    %c96_209 = arith.constant 96 : index
    %537 = memref.load %arg4[%c96_209] : memref<98xf32, #tpu.memory_space<smem>>
    %c1_210 = arith.constant 1 : index
    %c101_211 = arith.constant 101 : index
    %538 = vector.load %arg6[%c1_210, %c101_211] : memref<2x358xf32, #tpu.memory_space<vmem>>, vector<1x256xf32>
    %539 = vector.broadcast %537 : f32 to vector<1x256xf32>
    %540 = arith.mulf %538, %539 : vector<1x256xf32>
    %541 = arith.addf %536, %540 : vector<1x256xf32>
    %cst_212 = arith.constant 0.000000e+00 : f32
    %542 = vector.broadcast %cst_212 : f32 to vector<1x256xf32>
    %543 = arith.select %470, %541, %542 : vector<1x256xi1>, vector<1x256xf32>
    %544 = arith.addf %463, %543 : vector<1x256xf32>
    %c3_i32 = arith.constant 3 : i32
    %545 = vector.broadcast %c3_i32 : i32 to vector<1x256xi32>
    %546 = arith.addi %57, %545 : vector<1x256xi32>
    %c0_i32_213 = arith.constant 0 : i32
    %547 = vector.broadcast %c0_i32_213 : i32 to vector<1x256xi32>
    %548 = arith.cmpi sge, %546, %547 : vector<1x256xi32>
    %c16_i32_214 = arith.constant 16 : i32
    %549 = vector.broadcast %c16_i32_214 : i32 to vector<1x256xi32>
    %550 = arith.cmpi slt, %546, %549 : vector<1x256xi32>
    %551 = arith.andi %548, %550 : vector<1x256xi1>
    %cst_215 = arith.constant 0.000000e+00 : f32
    %552 = vector.broadcast %cst_215 : f32 to vector<1x256xf32>
    %c6 = arith.constant 6 : index
    %553 = memref.load %arg4[%c6] : memref<98xf32, #tpu.memory_space<smem>>
    %c0_216 = arith.constant 0 : index
    %c6_217 = arith.constant 6 : index
    %554 = vector.load %arg6[%c0_216, %c6_217] : memref<2x358xf32, #tpu.memory_space<vmem>>, vector<1x256xf32>
    %555 = vector.broadcast %553 : f32 to vector<1x256xf32>
    %556 = arith.mulf %554, %555 : vector<1x256xf32>
    %557 = arith.addf %552, %556 : vector<1x256xf32>
    %c13 = arith.constant 13 : index
    %558 = memref.load %arg4[%c13] : memref<98xf32, #tpu.memory_space<smem>>
    %c0_218 = arith.constant 0 : index
    %c22_219 = arith.constant 22 : index
    %559 = vector.load %arg6[%c0_218, %c22_219] : memref<2x358xf32, #tpu.memory_space<vmem>>, vector<1x256xf32>
    %560 = vector.broadcast %558 : f32 to vector<1x256xf32>
    %561 = arith.mulf %559, %560 : vector<1x256xf32>
    %562 = arith.addf %557, %561 : vector<1x256xf32>
    %c20_220 = arith.constant 20 : index
    %563 = memref.load %arg4[%c20_220] : memref<98xf32, #tpu.memory_space<smem>>
    %c0_221 = arith.constant 0 : index
    %c38_222 = arith.constant 38 : index
    %564 = vector.load %arg6[%c0_221, %c38_222] : memref<2x358xf32, #tpu.memory_space<vmem>>, vector<1x256xf32>
    %565 = vector.broadcast %563 : f32 to vector<1x256xf32>
    %566 = arith.mulf %564, %565 : vector<1x256xf32>
    %567 = arith.addf %562, %566 : vector<1x256xf32>
    %c27 = arith.constant 27 : index
    %568 = memref.load %arg4[%c27] : memref<98xf32, #tpu.memory_space<smem>>
    %c0_223 = arith.constant 0 : index
    %c54_224 = arith.constant 54 : index
    %569 = vector.load %arg6[%c0_223, %c54_224] : memref<2x358xf32, #tpu.memory_space<vmem>>, vector<1x256xf32>
    %570 = vector.broadcast %568 : f32 to vector<1x256xf32>
    %571 = arith.mulf %569, %570 : vector<1x256xf32>
    %572 = arith.addf %567, %571 : vector<1x256xf32>
    %c34_225 = arith.constant 34 : index
    %573 = memref.load %arg4[%c34_225] : memref<98xf32, #tpu.memory_space<smem>>
    %c0_226 = arith.constant 0 : index
    %c70_227 = arith.constant 70 : index
    %574 = vector.load %arg6[%c0_226, %c70_227] : memref<2x358xf32, #tpu.memory_space<vmem>>, vector<1x256xf32>
    %575 = vector.broadcast %573 : f32 to vector<1x256xf32>
    %576 = arith.mulf %574, %575 : vector<1x256xf32>
    %577 = arith.addf %572, %576 : vector<1x256xf32>
    %c41 = arith.constant 41 : index
    %578 = memref.load %arg4[%c41] : memref<98xf32, #tpu.memory_space<smem>>
    %c0_228 = arith.constant 0 : index
    %c86_229 = arith.constant 86 : index
    %579 = vector.load %arg6[%c0_228, %c86_229] : memref<2x358xf32, #tpu.memory_space<vmem>>, vector<1x256xf32>
    %580 = vector.broadcast %578 : f32 to vector<1x256xf32>
    %581 = arith.mulf %579, %580 : vector<1x256xf32>
    %582 = arith.addf %577, %581 : vector<1x256xf32>
    %c48_230 = arith.constant 48 : index
    %583 = memref.load %arg4[%c48_230] : memref<98xf32, #tpu.memory_space<smem>>
    %c0_231 = arith.constant 0 : index
    %c102 = arith.constant 102 : index
    %584 = vector.load %arg6[%c0_231, %c102] : memref<2x358xf32, #tpu.memory_space<vmem>>, vector<1x256xf32>
    %585 = vector.broadcast %583 : f32 to vector<1x256xf32>
    %586 = arith.mulf %584, %585 : vector<1x256xf32>
    %587 = arith.addf %582, %586 : vector<1x256xf32>
    %c55 = arith.constant 55 : index
    %588 = memref.load %arg4[%c55] : memref<98xf32, #tpu.memory_space<smem>>
    %c1_232 = arith.constant 1 : index
    %c6_233 = arith.constant 6 : index
    %589 = vector.load %arg6[%c1_232, %c6_233] : memref<2x358xf32, #tpu.memory_space<vmem>>, vector<1x256xf32>
    %590 = vector.broadcast %588 : f32 to vector<1x256xf32>
    %591 = arith.mulf %589, %590 : vector<1x256xf32>
    %592 = arith.addf %587, %591 : vector<1x256xf32>
    %c62 = arith.constant 62 : index
    %593 = memref.load %arg4[%c62] : memref<98xf32, #tpu.memory_space<smem>>
    %c1_234 = arith.constant 1 : index
    %c22_235 = arith.constant 22 : index
    %594 = vector.load %arg6[%c1_234, %c22_235] : memref<2x358xf32, #tpu.memory_space<vmem>>, vector<1x256xf32>
    %595 = vector.broadcast %593 : f32 to vector<1x256xf32>
    %596 = arith.mulf %594, %595 : vector<1x256xf32>
    %597 = arith.addf %592, %596 : vector<1x256xf32>
    %c69_236 = arith.constant 69 : index
    %598 = memref.load %arg4[%c69_236] : memref<98xf32, #tpu.memory_space<smem>>
    %c1_237 = arith.constant 1 : index
    %c38_238 = arith.constant 38 : index
    %599 = vector.load %arg6[%c1_237, %c38_238] : memref<2x358xf32, #tpu.memory_space<vmem>>, vector<1x256xf32>
    %600 = vector.broadcast %598 : f32 to vector<1x256xf32>
    %601 = arith.mulf %599, %600 : vector<1x256xf32>
    %602 = arith.addf %597, %601 : vector<1x256xf32>
    %c76 = arith.constant 76 : index
    %603 = memref.load %arg4[%c76] : memref<98xf32, #tpu.memory_space<smem>>
    %c1_239 = arith.constant 1 : index
    %c54_240 = arith.constant 54 : index
    %604 = vector.load %arg6[%c1_239, %c54_240] : memref<2x358xf32, #tpu.memory_space<vmem>>, vector<1x256xf32>
    %605 = vector.broadcast %603 : f32 to vector<1x256xf32>
    %606 = arith.mulf %604, %605 : vector<1x256xf32>
    %607 = arith.addf %602, %606 : vector<1x256xf32>
    %c83_241 = arith.constant 83 : index
    %608 = memref.load %arg4[%c83_241] : memref<98xf32, #tpu.memory_space<smem>>
    %c1_242 = arith.constant 1 : index
    %c70_243 = arith.constant 70 : index
    %609 = vector.load %arg6[%c1_242, %c70_243] : memref<2x358xf32, #tpu.memory_space<vmem>>, vector<1x256xf32>
    %610 = vector.broadcast %608 : f32 to vector<1x256xf32>
    %611 = arith.mulf %609, %610 : vector<1x256xf32>
    %612 = arith.addf %607, %611 : vector<1x256xf32>
    %c90 = arith.constant 90 : index
    %613 = memref.load %arg4[%c90] : memref<98xf32, #tpu.memory_space<smem>>
    %c1_244 = arith.constant 1 : index
    %c86_245 = arith.constant 86 : index
    %614 = vector.load %arg6[%c1_244, %c86_245] : memref<2x358xf32, #tpu.memory_space<vmem>>, vector<1x256xf32>
    %615 = vector.broadcast %613 : f32 to vector<1x256xf32>
    %616 = arith.mulf %614, %615 : vector<1x256xf32>
    %617 = arith.addf %612, %616 : vector<1x256xf32>
    %c97_246 = arith.constant 97 : index
    %618 = memref.load %arg4[%c97_246] : memref<98xf32, #tpu.memory_space<smem>>
    %c1_247 = arith.constant 1 : index
    %c102_248 = arith.constant 102 : index
    %619 = vector.load %arg6[%c1_247, %c102_248] : memref<2x358xf32, #tpu.memory_space<vmem>>, vector<1x256xf32>
    %620 = vector.broadcast %618 : f32 to vector<1x256xf32>
    %621 = arith.mulf %619, %620 : vector<1x256xf32>
    %622 = arith.addf %617, %621 : vector<1x256xf32>
    %cst_249 = arith.constant 0.000000e+00 : f32
    %623 = vector.broadcast %cst_249 : f32 to vector<1x256xf32>
    %624 = arith.select %551, %622, %623 : vector<1x256xi1>, vector<1x256xf32>
    %625 = arith.addf %544, %624 : vector<1x256xf32>
    %626 = arith.negf %625 : vector<1x256xf32>
    %627 = math.exp %626 : vector<1x256xf32>
    %cst_250 = arith.constant 1.000000e+00 : f32
    %628 = vector.broadcast %cst_250 : f32 to vector<1x256xf32>
    %629 = arith.addf %628, %627 : vector<1x256xf32>
    %630 = arith.divf %628, %629 : vector<1x256xf32>
    %631 = vector.broadcast %630 : vector<1x256xf32> to vector<32x256xf32>
    %632 = arith.mulf %30, %631 : vector<32x256xf32>
    %633 = arith.addf %632, %1 : vector<32x256xf32>
    %cst_251 = arith.constant 0.000000e+00 : f32
    %634 = vector.broadcast %cst_251 : f32 to vector<32x256xf32>
    %635 = arith.maximumf %633, %634 : vector<32x256xf32>
    %c0_252 = arith.constant 0 : index
    %c0_253 = arith.constant 0 : index
    %c0_254 = arith.constant 0 : index
    %636 = vector.load %arg5[%c0_252, %c0_253, %c0_254] : memref<1x32x256xf32, #tpu.memory_space<vmem>>, vector<1x32x256xf32>
    %637 = vector.shape_cast %636 : vector<1x32x256xf32> to vector<32x256xf32>
    %638 = vector.shape_cast %635 : vector<32x256xf32> to vector<1x32x256xf32>
    tpu.vector_store %arg5[%c0_252, %c0_253, %c0_254], %638 {strides = array<i32>} : memref<1x32x256xf32, #tpu.memory_space<vmem>>, vector<1x32x256xf32>,
    return
  }
  func.func @transform_0(%arg0: i32) -> (i32, i32, i32) {
    %c0_i32 = arith.constant 0 : i32
    %c0_i32_0 = arith.constant 0 : i32
    %c0_i32_1 = arith.constant 0 : i32
    return %arg0, %c0_i32, %c0_i32_0 : i32, i32, i32
  }
  func.func @transform_1(%arg0: i32) -> (i32, i32) {
    %c0_i32 = arith.constant 0 : i32
    %c0_i32_0 = arith.constant 0 : i32
    %c0_i32_1 = arith.constant 0 : i32
    return %c0_i32, %c0_i32_0 : i32, i32
  }
  func.func @transform_2(%arg0: i32) -> (i32, i32) {
    %c0_i32 = arith.constant 0 : i32
    %c0_i32_0 = arith.constant 0 : i32
    %c0_i32_1 = arith.constant 0 : i32
    return %c0_i32, %c0_i32_0 : i32, i32
  }
  func.func @transform_3(%arg0: i32) -> i32 {
    %c0_i32 = arith.constant 0 : i32
    %c0_i32_0 = arith.constant 0 : i32
    return %c0_i32 : i32
  }
  func.func @transform_4(%arg0: i32) -> (i32, i32, i32) {
    %c0_i32 = arith.constant 0 : i32
    %c0_i32_0 = arith.constant 0 : i32
    %c0_i32_1 = arith.constant 0 : i32
    return %arg0, %c0_i32, %c0_i32_0 : i32, i32, i32
  }
}

</mosaic_0001>

<bundles_post_ra>
// kernel: cbam_pallas.1
= control target key start
LH: loop header
LB: loop body
LE: loop exit
PB: predicated region body
PF: predicated region fallthrough
CT: control target
= control target key end

     0   :  { %9 = vsyncpa [#allocation4], 0  ;;  %s2161_s15 = smov 0   ;;  %s2892_s0 = inlined_call_operand.vmem [shape: f32[2,32,256], index: 0, kind: input, shape index: {}]   ;;  %s2893_s1 = inlined_call_operand.vmem [shape: f32[2,32], index: 1, kind: input, shape index: {}]   ;;  %s2894_s2 = inlined_call_operand.vmem [shape: f32[32,2], index: 2, kind: input, shape index: {}]   ;;  %s2895_s3 = inlined_call_operand.vmem [shape: f32[98], index: 3, kind: input, shape index: {}]   ;;  %s2896_s4 = inlined_call_operand.vmem [shape: f32[2,32,256], index: 4, kind: output, shape index: {}]  }
   0x1 LB: > { %s1863_s16 = sadd.s32 4294967295, %s2116_s15   ;;  %p1865_p0 = scmp.ge.s32.totalorder %s2116_s15, 1  ;;  %s2116_s15 = sphi %s2161_s15, %s15_s15  }
   0x2   : > { %p135_p1 = scmp.lt.s32.totalorder %s2116_s15, 3  ;;  %s154_s19 = sshll.u32 %s2895_s3, 4  ;;  %s155_s19 = int_to_ptr.vmem [resolvable:$true] %s154_s19 }
   0x3   : > { %p2030_p3 = scmp.eq.s32.totalorder %s1863_s16, 0  ;;  %s2091_s21 = scalar_lea.vmem %s155_s19, 16 }
   0x4   : > { %p2172_p2 = pnand %p1865_p0, %p135_p1  ;;  %p2092_p6 = scmp.ne.s32.totalorder %s155_s19, %s2091_s21 }
   0x5   : > { %p2099_p10 = scmp.lt.s32.totalorder %s155_s19, %s155_s19  ;;  %p2100_p11 = scmp.lt.s32.totalorder %s2091_s21, %s2091_s21 }
   0x6   : > { %p2026_p4 = pneg %p2172_p2 }
   0x7   : > { %p2101_p12 = por %p2100_p11, %p2099_p10 }
   0x8   : > { %p2027_p5 = pnand %p2030_p3, %p2026_p4 }
   0xa   : > { %p2093_p7 = pneg %p2027_p5 }
   0xc   : > { %p2094_p8 = pnand %p2093_p7, %p2092_p6 }
   0xe   : > { %p2095_p9 = pneg %p2094_p8 }
  0x10   : > { %p2102_p13 = pnand %p2101_p12, %p2095_p9 }
  0x12   : > { %2105 = shalt.err (!%p2102_p13)
}
  0x13   : > { %s2118_s22 = smov [#allocation3]   ;;  %175 = sbr.rel (%p2172_p2) target bundleno = 1392 (0x570), region = 36 }
  0x14   : > { %2029 = dma.vmem_to_smem (!%p2027_p5), %s155_s19, 16, %s2118_s22, [#allocation4]  }
  0x1a   : > { %2111 = dma.done.wait (%p2030_p3), [#allocation4], 16  }
  0x1b   : > { %2113 = vsyncadd (%p2030_p3), [#allocation4], 4294967280 }
  0x1c   : > { %181 = sfence }
  0x1d   : > { %p202_p0 = scmp.lt.s32.totalorder %s1863_s16, 1  ;;  %v2119_v16 = vmov 0.0|0.0   ;;  %vm348_vm0 = vcmask 1041408   ;;  %vm520_vm1 = vcmask 1043458   ;;  %vm2120_vm2 = vmmov 0   ;;  %v331_v39 = vld [vmem:[%s2894_s2] sm:$0xff] }
  0x1e   : > { %2016 = vmatprep.subr.bf16.mxu0 %v2119_v16  ;;  %v2121_v17 = vmov 0.0   ;;  %vm521_vm3 = vmor %vm520_vm1, %vm348_vm0  ;;  %vm522_vm4 = vcmask 832516   ;;  %v248_v18 = vlaneseq  ;;  %v255_v38 = vld [vmem:[%s2893_s1] sm:$0x3]  ;;  %vm256_vm7 = vcmask 261120   ;;  %v332_v43 = vld [vmem:[%s2894_s2 + $0x8] sm:$0xff] }
  0x1f   : > { %s2941_s16 = smov (!%p202_p0, %s1863_s16), 1  ;;  %2005 = vmatprep.mubr.msk.f32.mxu0 %vm2120_vm2, %v2121_v17  ;;  %vm523_vm5 = vmor %vm522_vm4, %vm521_vm3  ;;  %vm335_vm8 = vcmask 15360   ;;  %v333_v44 = vld [vmem:[%s2894_s2 + $0x10] sm:$0xff]  ;;  %v334_v45 = vld [vmem:[%s2894_s2 + $0x18] sm:$0xff]  ;;  %s2123_s11 = smov 51   ;;  %vm545_vm11 = vcmask 416768  }
  0x20   : > { %s1985_s23 = sshll.u32 %s2941_s16, 6  ;;  %524 = vst.msk [vmem:[#allocation2] sm:$0x3f] %vm523_vm5, %v2121_v17  ;;  %v2235_v21 = vand.u32 127, %v248_v18  ;;  %2010 = vmatprep.mubr.msk.f32.mxu1 %vm335_vm8, %v331_v39  ;;  %vm2309_vm9 = vcmp.ge.s32.totalorder %v248_v18, 51  ;;  %vm550_vm10 = vcmp.lt.s32.totalorder %v248_v18, 307 }
  0x21   : > { %s2191_s26 = scalar_lea.vmem %s2892_s0, %s1985_s23  ;;  %vm551_vm12 = vmand %vm2309_vm9, %vm550_vm10  ;;  %s1905_s12 = sld [smem:[#allocation3 + $0x39]]  ;;  %vm623_vm13 = vcmask 916480   ;;  %vm634_vm14 = vcmask 785408   ;;  %vm645_vm15 = vcmask 654336   ;;  %vm667_vm1 = vcmask 392192  }
  0x22   : > { %v2194_v0 = vld [vmem:[%s2191_s26] sm:$0xff]  ;;  %v2197_v1 = vld [vmem:[%s2191_s26 + $0x8] sm:$0xff]  ;;  %v2200_v2 = vld [vmem:[%s2191_s26 + $0x10] sm:$0xff]  ;;  %2911 = vst [vmem:[#allocation6_spill] sm:$0xff] %v2235_v21  ;;  %vm250_vm6 = vcmp.eq.s32.totalorder %v2235_v21, 0  ;;  %s1906_s13 = sld [smem:[#allocation3 + $0x40]] }
  0x23   : > { %v236_v3 = vmax.f32 %v2194_v0, %v2197_v1  ;;  %v220_v4 = vadd.f32 %v2197_v1, %v2194_v0  ;;  %v2207_v5 = vld [vmem:[%s2191_s26 + $0x18] sm:$0xff]  ;;  %v2214_v8 = vld [vmem:[%s2191_s26 + $0x30] sm:$0xff]  ;;  %v2220_v10 = vld [vmem:[%s2191_s26 + $0x20] sm:$0xff]  ;;  %s1919_s14 = sld [smem:[#allocation3 + $0x3a]]  ;;  %s1920_s17 = sld [smem:[#allocation3 + $0x41]]  ;;  %vm917_vm4 = vcmask 1039360  }
  0x24   : > { %v239_v6 = vmax.f32 %v2200_v2, %v2207_v5  ;;  %v223_v7 = vadd.f32 %v2207_v5, %v2200_v2  ;;  %v2217_v9 = vld [vmem:[%s2191_s26 + $0x38] sm:$0xff]  ;;  %v2223_v11 = vld [vmem:[%s2191_s26 + $0x28] sm:$0xff]  ;;  %s1907_s18 = sld [smem:[#allocation3 + $0x47]]  ;;  %s1908_s19 = sld [smem:[#allocation3 + $0x4e]]  ;;  %vm1243_vm10 = vcmask 1022976  }
  0x25   : > { %237 = vmax.xlane.f32.xlu1 %v236_v3  ;;  %221 = vadd.xlane.f32.xlu0 %v220_v4  ;;  %v229_v12 = vadd.f32 %v2217_v9, %v2214_v8  ;;  %v226_v13 = vadd.f32 %v2223_v11, %v2220_v10  ;;  %v245_v14 = vmax.f32 %v2214_v8, %v2217_v9  ;;  %s1933_s20 = sld [smem:[#allocation3 + $0x3b]]  ;;  %s1947_s21 = sld [smem:[#allocation3 + $0x3c]] }
  0x26   : > { %v242_v15 = vmax.f32 %v2220_v10, %v2223_v11  ;;  %s2124_s22 = smov 112   ;;  %s2125_s24 = smov 96  }
  0x27   : > { %s1921_s25 = sld [smem:[#allocation3 + $0x48]]  ;;  %s1934_s27 = sld [smem:[#allocation3 + $0x42]] }
  0x28   : > { %s1909_s28 = sld [smem:[#allocation3 + $0x55]]  ;;  %s1922_s29 = sld [smem:[#allocation3 + $0x4f]] }
  0x29   : > { %240 = vmax.xlane.f32.xlu1 %v239_v6  ;;  %224 = vadd.xlane.f32.xlu0 %v223_v7  ;;  %s2126_s30 = smov 80   ;;  %s2127_s5 = smov 64  }
  0x2a   : > { %s1948_s6 = sld [smem:[#allocation3 + $0x43]]  ;;  %s1961_s7 = sld [smem:[#allocation3 + $0x3d]] }
  0x2b   : > { %s1935_s8 = sld [smem:[#allocation3 + $0x49]]  ;;  %s1910_s9 = sld [smem:[#allocation3 + $0x5c]] }
  0x2c   : > { %s1923_s10 = sld [smem:[#allocation3 + $0x56]] }
  0x2d   : > { %230 = vadd.xlane.f32.xlu1 %v229_v12  ;;  %227 = vadd.xlane.f32.xlu0 %v226_v13 }
  0x31   : > { %246 = vmax.xlane.f32.xlu1 %v245_v14  ;;  %243 = vmax.xlane.f32.xlu0 %v242_v15 }
  0xb2   : > { %v238_v19 = vpop.xlane.xlu1 %237  ;;  %v222_v20 = vpop.xlane.xlu0 %221 }
  0xb3   : > { %v232_v22 = vmul.f32 0.00390625, %v222_v20 }
  0xb5   : > { %v251_v26 = vsel %vm250_vm6, %v232_v22, %v238_v19 }
  0xb6   : > { %v241_v23 = vpop.xlane.xlu1 %240  ;;  %v225_v24 = vpop.xlane.xlu0 %224 }
  0xb7   : > { %v233_v25 = vmul.f32 0.00390625, %v225_v24 }
  0xb9   : > { %v252_v27 = vsel %vm250_vm6, %v233_v25, %v241_v23 }
  0xba   : > { %v231_v28 = vpop.xlane.xlu1 %230  ;;  %v228_v29 = vpop.xlane.xlu0 %227  ;;  %v2017_v30 = vpack.c.bf16 %v252_v27, %v251_v26 }
  0xbb   : > { %v235_v31 = vmul.f32 0.00390625, %v231_v28  ;;  %v234_v32 = vmul.f32 0.00390625, %v228_v29 }
  0xbc   : > { %2018 = vmatpush3.bf16.msra.mxu0 %v2017_v30 }
  0xbd   : > { %2019 = vmatprep.subr.bf16.mxu0 %v2119_v16 }
  0xbe   : > { %v247_v33 = vpop.xlane.xlu1 %246  ;;  %v244_v34 = vpop.xlane.xlu0 %243 }
  0xbf   : > { %v254_v35 = vsel %vm250_vm6, %v235_v31, %v247_v33  ;;  %v253_v36 = vsel %vm250_vm6, %v234_v32, %v244_v34 }
  0xc0   : > { %v2020_v37 = vpack.c.bf16 %v254_v35, %v253_v36  ;;  %v2122_v36 = vmov 1966171168  }
  0xc2   : > { %2021 = vmatpush3.bf16.msra.mxu0 %v2020_v37  ;;  %v529_v37 = vunpack.c.l.s4 %v2122_v36 }
  0xc5   : > { %2006 = vmatmul.mubr.msk.f32.vlgmr.msra.gmra.mrb[0].mxu0 %vm256_vm7, %v255_v38 }
 0x198   : > { %v326_v40 = vpop.f32.mrb[0].mxu0 }
 0x199   : > { %v330_v41 = vmax.f32 %v326_v40, 0.0  ;;  %v2007_v42 = vpop.f32.mrb[1].mxu0 }
 0x19b   : > { %2008 = vmatprep.subr.msk.mxu1 %vm348_vm0, %v330_v41 }
 0x19c   : > { %2009 = vmatpush3.msk.msra.mxu1 %vm348_vm0, %v330_v41  ;;  %vm656_vm0 = vcmask 523264  }
 0x19d   : > { %2011 = vmatmul.mubr.msk.f32.vlgmr.msra.gmra.mrb[0].mxu1 %vm335_vm8, %v332_v43 }
 0x19e   : > { %2013 = vmatprep.mubr.msk.f32.mxu1 %vm335_vm8, %v333_v44 }
 0x1a1   : > { %2014 = vmatmul.mubr.msk.f32.gmra.mrb[2].mxu1 %vm335_vm8, %v334_v45 }
 0x270   : > { %v2012_v46 = vpop.f32.mrb[0].mxu1 }
 0x271   : > { %v418_v47 = vpop.f32.mrb[1].mxu1  ;;  %v440_v48 = vsel %vm335_vm8, %v2012_v46, 0.0  ;;  %v530_v46 = vunpack.c.0.s8 %v529_v37 }
 0x272   : > { %441 = vadd.xlane.f32.xlu1 %v440_v48  ;;  %v437_v49 = vsel %vm335_vm8, %v418_v47, 0.0  ;;  %v2305_v47 = vshrl.u32 %v248_v18, 7 }
 0x273   : > { %438 = vadd.xlane.f32.xlu0 %v437_v49 }
 0x274   : > { %v2015_v50 = vpop.f32.mrb[2].mxu1 }
 0x275   : > { %v428_v51 = vpop.f32.mrb[3].mxu1  ;;  %v446_v52 = vsel %vm335_vm8, %v2015_v50, 0.0 }
 0x276   : > { %447 = vadd.xlane.f32.xlu1 %v446_v52  ;;  %v443_v53 = vsel %vm335_vm8, %v428_v51, 0.0 }
 0x277   : > { %444 = vadd.xlane.f32.xlu0 %v443_v53 }
 0x2ff   : > { %v442_v54 = vpop.xlane.xlu1 %441 }
 0x300   : > { %v1881_v55 = vmul.f32 -1.442695, %v442_v54  ;;  %v439_v56 = vpop.xlane.xlu0 %438 }
 0x301   : > { %v1880_v57 = vmul.f32 -1.442695, %v439_v56  ;;  %v533_v56 = vsub.s32 %v530_v46, %v2305_v47  ;;  %v1339_v46 = vstv %s1948_s6  ;;  %s1977_s6 = sld [smem:[#allocation3 + $0x4c]] }
 0x302   : > { %2058 = vpow2.f32 %v1881_v55 }
 0x303   : > { %2060 = vpow2.f32 %v1880_v57  ;;  %v448_v58 = vpop.xlane.xlu1 %447 }
 0x304   : > { %v1883_v59 = vmul.f32 -1.442695, %v448_v58  ;;  %v445_v60 = vpop.xlane.xlu0 %444 }
 0x305   : > { %v1882_v61 = vmul.f32 -1.442695, %v445_v60 }
 0x306   : > { %2062 = vpow2.f32 %v1883_v59 }
 0x307   : > { %2064 = vpow2.f32 %v1882_v61 }
 0x30c   : > { %v2059_v62 = vpop.eup %2058 }
 0x30d   : > { %v2061_v63 = vpop.eup %2060  ;;  %v462_v3 = vadd.f32 1.0, %v2059_v62 }
 0x30e   : > { %v461_v4 = vadd.f32 1.0, %v2061_v63 }
 0x30f   : > { %2066 = vrcp.f32 %v462_v3 }
 0x310   : > { %v2063_v6 = vpop.eup %2062  ;;  %2068 = vrcp.f32 %v461_v4 }
 0x311   : > { %v2065_v7 = vpop.eup %2064  ;;  %v464_v12 = vadd.f32 1.0, %v2063_v6 }
 0x312   : > { %v463_v13 = vadd.f32 1.0, %v2065_v7 }
 0x313   : > { %2070 = vrcp.f32 %v464_v12 }
 0x314   : > { %2072 = vrcp.f32 %v463_v13 }
 0x319   : > { %v2067_v14 = vpop.eup %2066 }
 0x31a   : > { %v2069_v15 = vpop.eup %2068  ;;  %v2265_v16 = vmul.f32 %v2067_v14, %v2200_v2  ;;  %v2268_v17 = vmul.f32 %v2067_v14, %v2207_v5 }
 0x31b   : > { %v2271_v19 = vmul.f32 %v2069_v15, %v2194_v0  ;;  %v2274_v20 = vmul.f32 %v2069_v15, %v2197_v1 }
 0x31c   : > { %2912 = vst [vmem:[#allocation7_spill] sm:$0xff] %v2265_v16  ;;  %2913 = vst [vmem:[#allocation8_spill] sm:$0xff] %v2268_v17 }
 0x31d   : > { %2914 = vst [vmem:[#allocation9_spill] sm:$0xff] %v2271_v19  ;;  %2915 = vst [vmem:[#allocation10_spill] sm:$0xff] %v2274_v20  ;;  %v2071_v22 = vpop.eup %2070  ;;  %v481_v0 = vadd.f32 %v2265_v16, %v2271_v19  ;;  %v490_v1 = vadd.f32 %v2268_v17, %v2274_v20 }
 0x31e   : > { %v2073_v23 = vpop.eup %2072  ;;  %v2277_v24 = vmul.f32 %v2071_v22, %v2214_v8  ;;  %v2280_v25 = vmul.f32 %v2071_v22, %v2217_v9 }
 0x31f   : > { %v2283_v2 = vmul.f32 %v2073_v23, %v2220_v10  ;;  %v2286_v5 = vmul.f32 %v2073_v23, %v2223_v11 }
 0x320   : > { %2916 = vst [vmem:[#allocation11_spill] sm:$0xff] %v2277_v24  ;;  %2917 = vst [vmem:[#allocation12_spill] sm:$0xff] %v2280_v25  ;;  %v503_v26 = vmax.f32 %v2265_v16, %v2277_v24  ;;  %v512_v8 = vmax.f32 %v2268_v17, %v2280_v25 }
 0x321   : > { %2918 = vst [vmem:[#allocation13_spill] sm:$0xff] %v2283_v2  ;;  %2919 = vst [vmem:[#allocation14_spill] sm:$0xff] %v2286_v5  ;;  %v502_v9 = vmax.f32 %v2271_v19, %v2283_v2  ;;  %v511_v10 = vmax.f32 %v2274_v20, %v2286_v5  ;;  %v482_v11 = vadd.f32 %v481_v0, %v2283_v2 }
 0x322   : > { %v491_v27 = vadd.f32 %v490_v1, %v2286_v5 }
 0x323   : > { %v504_v28 = vmax.f32 %v502_v9, %v503_v26  ;;  %v513_v29 = vmax.f32 %v511_v10, %v512_v8  ;;  %v483_v30 = vadd.f32 %v482_v11, %v2277_v24  ;;  %v839_v26 = vstv %s1905_s12  ;;  %s2128_s12 = smov 48  }
 0x324   : > { %v492_v31 = vadd.f32 %v491_v27, %v2280_v25  ;;  %v849_v8 = vstv %s1906_s13  ;;  %v1003_v11 = vstv %s1919_s14  ;;  %v1013_v27 = vstv %s1920_s17  ;;  %s1962_s13 = sld [smem:[#allocation3 + $0x44]]  ;;  %s1975_s14 = sld [smem:[#allocation3 + $0x3e]] }
 0x325   : > { %v505_v32 = vrot.slane %v504_v28, 4  ;;  %v514_v33 = vrot.slane %v513_v29, 4  ;;  %v484_v34 = vrot.slane %v483_v30, 4  ;;  %s1936_s17 = sld [smem:[#allocation3 + $0x50]] }
 0x326   : > { %v493_v35 = vrot.slane %v492_v31, 4 }
 0x327   : > { %v506_v38 = vmax.f32 %v504_v28, %v505_v32  ;;  %v515_v39 = vmax.f32 %v513_v29, %v514_v33  ;;  %v485_v40 = vadd.f32 %v484_v34, %v483_v30  ;;  %v859_v30 = vstv %s1907_s18  ;;  %s1924_s18 = sld [smem:[#allocation3 + $0x5d]] }
 0x328   : > { %v494_v41 = vadd.f32 %v493_v35, %v492_v31  ;;  %v869_v31 = vstv %s1908_s19  ;;  %v1165_v34 = vstv %s1933_s20  ;;  %v1329_v35 = vstv %s1947_s21  ;;  %s2129_s19 = smov 32   ;;  %s1950_s20 = sld [smem:[#allocation3 + $0x51]] }
 0x329   : > { %v507_v42 = vrot.slane %v506_v38, 2  ;;  %v516_v43 = vrot.slane %v515_v39, 2  ;;  %v486_v44 = vrot.slane %v485_v40, 2  ;;  %s1963_s21 = sld [smem:[#allocation3 + $0x4b]] }
 0x32a   : > { %v495_v45 = vrot.slane %v494_v41, 2 }
 0x32b   : > { %v508_v48 = vmax.f32 %v506_v38, %v507_v42  ;;  %v517_v49 = vmax.f32 %v515_v39, %v516_v43  ;;  %v487_v50 = vadd.f32 %v486_v44, %v485_v40  ;;  %v1023_v38 = vstv %s1921_s25  ;;  %s1976_s25 = sld [smem:[#allocation3 + $0x45]] }
 0x32c   : > { %v496_v51 = vadd.f32 %v495_v45, %v494_v41  ;;  %v1175_v39 = vstv %s1934_s27  ;;  %v879_v42 = vstv %s1909_s28  ;;  %v1033_v43 = vstv %s1922_s29  ;;  %s1937_s27 = sld [smem:[#allocation3 + $0x57]]  ;;  %s1951_s28 = sld [smem:[#allocation3 + $0x58]] }
 0x32d   : > { %v509_v52 = vrot.slane %v508_v48, 1  ;;  %v518_v53 = vrot.slane %v517_v49, 1  ;;  %v488_v54 = vrot.slane %v487_v50, 1  ;;  %s1964_s29 = sld [smem:[#allocation3 + $0x52]] }
 0x32e   : > { %v497_v55 = vrot.slane %v496_v51, 1 }
 0x32f   : > { %v510_v57 = vmax.f32 %v508_v48, %v509_v52  ;;  %v519_v58 = vmax.f32 %v517_v49, %v518_v53  ;;  %v489_v59 = vadd.f32 %v488_v54, %v487_v50  ;;  %v1493_v48 = vstv %s1961_s7  ;;  %s1886_s7 = sld [smem:[#allocation3 + $0x15]] }
 0x330   : > { %v498_v60 = vadd.f32 %v497_v55, %v496_v51  ;;  %v1185_v51 = vstv %s1935_s8  ;;  %v889_v52 = vstv %s1910_s9  ;;  %v1043_v55 = vstv %s1923_s10  ;;  %s1888_s8 = sld [smem:[#allocation3 + $0x23]]  ;;  %s1884_s9 = sld [smem:[#allocation3 + $0x7]] }
 0x331   : > { %v555_v61 = vcombine.low %v510_v57, %v519_v58  ;;  %v500_v62 = vmul.f32 0.03125, %v489_v59  ;;  %v1503_v59 = vstv %s1962_s13  ;;  %s1899_s10 = sld [smem:[#allocation3 + $0xf]]  ;;  %s1900_s13 = sld [smem:[#allocation3 + $0x16]] }
 0x332   : > { %v501_v63 = vmul.f32 0.03125, %v498_v60  ;;  %v1657_v60 = vstv %s1975_s14  ;;  %s1887_s14 = sld [smem:[#allocation3 + $0x1c]] }
 0x333   : > { %v562_v3 = vrot.slane %v555_v61, %v533_v56 }
 0x334   : > { %v527_v4 = vcombine.low %v500_v62, %v501_v63  ;;  %v1195_v63 = vstv %s1936_s17  ;;  %s1926_s17 = sld [smem:[#allocation3 + $0xa]] }
 0x335   : > { %v569_v6 = vrot.slane %v562_v3, %v533_v56  ;;  %v1053_v3 = vstv %s1924_s18  ;;  %s1898_s18 = sld [smem:[#allocation3 + $0x8]] }
 0x336   : > { %v534_v7 = vrot.slane %v527_v4, %v533_v56 }
 0x337   : > { %570 = vrot.lane.b32.xlu1 %v569_v6, %s2123_s11 }
 0x338   : > { %v541_v12 = vrot.slane %v534_v7, %v533_v56  ;;  %v1359_v7 = vstv %s1950_s20  ;;  %s1914_s20 = sld [smem:[#allocation3 + $0x17]] }
 0x33a   : > { %542 = vrot.lane.b32.xlu0 %v541_v12, %s2123_s11  ;;  %s1949_s11 = sld [smem:[#allocation3 + $0x4a]]  ;;  %v1513_v12 = vstv %s1963_s21  ;;  %s1912_s21 = sld [smem:[#allocation3 + $0x9]] }
 0x340   : > { %v1349_v56 = vstv %s1949_s11  ;;  %s1885_s11 = sld [smem:[#allocation3 + $0xe]] }
 0x3a9   : > { %v571_v14 = vpop.permute.xlu1 %570 }
 0x3aa   : > { %v572_v15 = vrot.slane %v571_v14, 7 }
 0x3ac   : > { %v543_v22 = vpop.permute.xlu0 %542  ;;  %v573_v23 = vsel %vm545_vm11, %v572_v15, %v571_v14  ;;  %v1667_v15 = vstv %s1976_s25  ;;  %s1927_s25 = sld [smem:[#allocation3 + $0x11]] }
 0x3ad   : > { %v544_v0 = vrot.slane %v543_v22, 7  ;;  %576 = vst.msk [vmem:[#allocation2 + $0x1] ss:$2 sm:$0x7] %vm551_vm12, %v573_v23 }
 0x3af   : > { %v546_v1 = vsel %vm545_vm11, %v544_v0, %v543_v22  ;;  %v1205_v22 = vstv %s1937_s27  ;;  %s1913_s27 = sld [smem:[#allocation3 + $0x10]]  ;;  %vm1407_vm11 = vcmask 1014784  }
 0x3b0   : > { %552 = vst.msk [vmem:[#allocation2] ss:$2 sm:$0x7] %vm551_vm12, %v546_v1  ;;  %v1369_v1 = vstv %s1951_s28  ;;  %s1915_s28 = sld [smem:[#allocation3 + $0x1e]] }
 0x3b4   : > { %v2316_v18 = vld [vmem:[#allocation2 + $0x1] ss:$2 sm:$0x7] }
 0x3b5   : > { %v840_v9 = vmul.f32 %v839_v26, %v2316_v18  ;;  %v850_v10 = vmul.f32 %v849_v8, %v2316_v18  ;;  %v1004_v28 = vmul.f32 %v1003_v11, %v2316_v18  ;;  %v1014_v29 = vmul.f32 %v1013_v27, %v2316_v18 }
 0x3b6   : > { %v860_v32 = vmul.f32 %v859_v30, %v2316_v18  ;;  %v870_v33 = vmul.f32 %v869_v31, %v2316_v18  ;;  %v1166_v36 = vmul.f32 %v1165_v34, %v2316_v18  ;;  %v1330_v37 = vmul.f32 %v1329_v35, %v2316_v18 }
 0x3b7   : > { %842 = vrot.lane.b32.xlu1 %v840_v9, %s2124_s22  ;;  %852 = vrot.lane.b32.xlu0 %v850_v10, %s2125_s24  ;;  %v1024_v40 = vmul.f32 %v1023_v38, %v2316_v18  ;;  %v1176_v41 = vmul.f32 %v1175_v39, %v2316_v18  ;;  %v880_v44 = vmul.f32 %v879_v42, %v2316_v18  ;;  %v1523_v26 = vstv %s1964_s29  ;;  %v2372_v10 = vld [vmem:[#allocation2] ss:$2 sm:$0x7]  ;;  %s1901_s29 = sld [smem:[#allocation3 + $0x1d]] }
 0x3b8   : > { %v1034_v45 = vmul.f32 %v1033_v43, %v2316_v18  ;;  %v1340_v49 = vmul.f32 %v1339_v46, %v2316_v18  ;;  %v1494_v50 = vmul.f32 %v1493_v48, %v2316_v18  ;;  %v1186_v53 = vmul.f32 %v1185_v51, %v2316_v18 }
 0x3b9   : > { %v890_v54 = vmul.f32 %v889_v52, %v2316_v18  ;;  %v1044_v57 = vmul.f32 %v1043_v55, %v2316_v18  ;;  %v1350_v58 = vmul.f32 %v1349_v56, %v2316_v18  ;;  %v1504_v61 = vmul.f32 %v1503_v59, %v2316_v18 }
 0x3ba   : > { %v1658_v62 = vmul.f32 %v1657_v60, %v2316_v18  ;;  %v1196_v4 = vmul.f32 %v1195_v63, %v2316_v18  ;;  %v1054_v6 = vmul.f32 %v1053_v3, %v2316_v18  ;;  %v1360_v13 = vmul.f32 %v1359_v7, %v2316_v18 }
 0x3bb   : > { %1006 = vrot.lane.b32.xlu1 %v1004_v28, %s2124_s22  ;;  %1016 = vrot.lane.b32.xlu0 %v1014_v29, %s2125_s24  ;;  %v1514_v14 = vmul.f32 %v1513_v12, %v2316_v18  ;;  %v1668_v23 = vmul.f32 %v1667_v15, %v2316_v18  ;;  %v1206_v0 = vmul.f32 %v1205_v22, %v2316_v18  ;;  %v1677_v11 = vstv %s1977_s6  ;;  %s1954_s6 = sld [smem:[#allocation3 + $0xc]] }
 0x3bc   : > { %v1370_v8 = vmul.f32 %v1369_v1, %v2316_v18  ;;  %v1524_v9 = vmul.f32 %v1523_v26, %v2316_v18  ;;  %v639_v27 = vstv %s1886_s7  ;;  %v1678_v28 = vmul.f32 %v1677_v11, %v2316_v18  ;;  %s1940_s7 = sld [smem:[#allocation3 + $0xb]] }
 0x3bd   : > { %v640_v29 = vmul.f32 %v639_v27, %v2372_v10  ;;  %v661_v30 = vstv %s1888_s8  ;;  %v617_v31 = vstv %s1884_s9  ;;  %v785_v34 = vstv %s1899_s10  ;;  %s1903_s8 = sld [smem:[#allocation3 + $0x2b]]  ;;  %s1902_s9 = sld [smem:[#allocation3 + $0x24]] }
 0x3be   : > { %v628_v35 = vstv %s1885_s11  ;;  %v795_v38 = vstv %s1900_s13  ;;  %v650_v39 = vstv %s1887_s14  ;;  %v1101_v42 = vstv %s1926_s17  ;;  %s1942_s10 = sld [smem:[#allocation3 + $0x19]]  ;;  %s1941_s11 = sld [smem:[#allocation3 + $0x12]] }
 0x3bf   : > { %862 = vrot.lane.b32.xlu1 %v860_v32, %s2126_s30  ;;  %872 = vrot.lane.b32.xlu0 %v870_v33, %s2127_s5  ;;  %v662_v32 = vmul.f32 %v661_v30, %v2372_v10  ;;  %v618_v33 = vmul.f32 %v617_v31, %v2372_v10  ;;  %v775_v43 = vstv %s1898_s18  ;;  %v959_v46 = vstv %s1914_s20  ;;  %s1968_s13 = sld [smem:[#allocation3 + $0xd]]  ;;  %s1928_s14 = sld [smem:[#allocation3 + $0x18]] }
 0x3c0   : > { %v939_v48 = vstv %s1912_s21  ;;  %v1111_v51 = vstv %s1927_s25  ;;  %v949_v52 = vstv %s1913_s27  ;;  %v969_v55 = vstv %s1915_s28  ;;  %s1917_s17 = sld [smem:[#allocation3 + $0x2c]]  ;;  %s1916_s18 = sld [smem:[#allocation3 + $0x25]] }
 0x3c1   : > { %v805_v56 = vstv %s1901_s29  ;;  %v1429_v59 = vstv %s1954_s6  ;;  %s1956_s20 = sld [smem:[#allocation3 + $0x1a]]  ;;  %s1955_s21 = sld [smem:[#allocation3 + $0x13]] }
 0x3c2   : > { %v1265_v60 = vstv %s1940_s7  ;;  %s1930_s25 = sld [smem:[#allocation3 + $0x26]]  ;;  %s1929_s27 = sld [smem:[#allocation3 + $0x1f]] }
 0x3c3   : > { %1168 = vrot.lane.b32.xlu1 %v1166_v36, %s2124_s22  ;;  %1332 = vrot.lane.b32.xlu0 %v1330_v37, %s2124_s22  ;;  %v786_v36 = vmul.f32 %v785_v34, %v2372_v10  ;;  %v629_v37 = vmul.f32 %v628_v35, %v2372_v10  ;;  %v825_v63 = vstv %s1903_s8  ;;  %v815_v3 = vstv %s1902_s9  ;;  %s1944_s28 = sld [smem:[#allocation3 + $0x27]]  ;;  %s1943_s29 = sld [smem:[#allocation3 + $0x20]] }
 0x3c4   : > { %v1285_v7 = vstv %s1942_s10  ;;  %v1275_v12 = vstv %s1941_s11  ;;  %s1970_s6 = sld [smem:[#allocation3 + $0x1b]]  ;;  %s1969_s7 = sld [smem:[#allocation3 + $0x14]] }
 0x3c5   : > { %v1593_v15 = vstv %s1968_s13  ;;  %v1121_v22 = vstv %s1928_s14  ;;  %s1945_s8 = sld [smem:[#allocation3 + $0x2e]]  ;;  %s1957_s9 = sld [smem:[#allocation3 + $0x21]] }
 0x3c6   : > { %v989_v1 = vstv %s1917_s17  ;;  %v979_v26 = vstv %s1916_s18  ;;  %s1971_s10 = sld [smem:[#allocation3 + $0x22]]  ;;  %s1931_s11 = sld [smem:[#allocation3 + $0x2d]] }
 0x3c7   : > { %1026 = vrot.lane.b32.xlu1 %v1024_v40, %s2126_s30  ;;  %1178 = vrot.lane.b32.xlu0 %v1176_v41, %s2125_s24  ;;  %v796_v40 = vmul.f32 %v795_v38, %v2372_v10  ;;  %v651_v41 = vmul.f32 %v650_v39, %v2372_v10  ;;  %v1449_v11 = vstv %s1956_s20  ;;  %v1439_v27 = vstv %s1955_s21  ;;  %s1972_s13 = sld [smem:[#allocation3 + $0x29]]  ;;  %s1958_s14 = sld [smem:[#allocation3 + $0x28]] }
 0x3c8   : > { %v1141_v30 = vstv %s1930_s25  ;;  %v1131_v31 = vstv %s1929_s27  ;;  %s1938_s17 = sld [smem:[#allocation3 + $0x5e]]  ;;  %s1959_s18 = sld [smem:[#allocation3 + $0x2f]] }
 0x3c9   : > { %v1305_v34 = vstv %s1944_s28  ;;  %v1295_v35 = vstv %s1943_s29  ;;  %s1965_s20 = sld [smem:[#allocation3 + $0x59]]  ;;  %s1973_s21 = sld [smem:[#allocation3 + $0x30]] }
 0x3ca   : > { %v1306_v38 = vmul.f32 %v1305_v34, %v2372_v10  ;;  %v1296_v39 = vmul.f32 %v1295_v35, %v2372_v10  ;;  %s1966_s25 = sld [smem:[#allocation3 + $0x60]]  ;;  %s1952_s27 = sld [smem:[#allocation3 + $0x5f]] }
 0x3cb   : > { %882 = vrot.lane.b32.xlu1 %v880_v44, %s2128_s12  ;;  %1036 = vrot.lane.b32.xlu0 %v1034_v45, %s2127_s5  ;;  %v1102_v44 = vmul.f32 %v1101_v42, %v2372_v10  ;;  %v776_v45 = vmul.f32 %v775_v43, %v2372_v10  ;;  %s1980_s28 = sld [smem:[#allocation3 + $0x61]]  ;;  %s1978_s29 = sld [smem:[#allocation3 + $0x53]] }
 0x3cf   : > { %1342 = vrot.lane.b32.xlu1 %v1340_v49, %s2125_s24  ;;  %1496 = vrot.lane.b32.xlu0 %v1494_v50, %s2124_s22  ;;  %v960_v49 = vmul.f32 %v959_v46, %v2372_v10  ;;  %v940_v50 = vmul.f32 %v939_v48, %v2372_v10  ;;  %v1315_v46 = vstv %s1945_s8  ;;  %v1459_v48 = vstv %s1957_s9  ;;  %s1893_s8 = sld [smem:[#allocation3 + $0x46]]  ;;  %s1892_s9 = sld [smem:[#allocation3 + $0x3f]] }
 0x3d3   : > { %1188 = vrot.lane.b32.xlu1 %v1186_v53, %s2126_s30  ;;  %892 = vrot.lane.b32.xlu0 %v890_v54, %s2129_s19  ;;  %v1112_v53 = vmul.f32 %v1111_v51, %v2372_v10  ;;  %v950_v54 = vmul.f32 %v949_v52, %v2372_v10  ;;  %v1316_v51 = vmul.f32 %v1315_v46, %v2372_v10 }
 0x3d4   : > { %v1460_v52 = vmul.f32 %v1459_v48, %v2372_v10 }
 0x3d5   : > { %v708_v46 = vstv %s1893_s8  ;;  %v698_v48 = vstv %s1892_s9  ;;  %s2133_s8 = smov 124   ;;  %s1890_s9 = sld [smem:[#allocation3 + $0x31]] }
 0x3d7   : > { %1046 = vrot.lane.b32.xlu1 %v1044_v57, %s2128_s12  ;;  %1352 = vrot.lane.b32.xlu0 %v1350_v58, %s2126_s30  ;;  %v970_v57 = vmul.f32 %v969_v55, %v2372_v10  ;;  %v806_v58 = vmul.f32 %v805_v56, %v2372_v10 }
 0x3db   : > { %1506 = vrot.lane.b32.xlu1 %v1504_v61, %s2125_s24  ;;  %1660 = vrot.lane.b32.xlu0 %v1658_v62, %s2124_s22  ;;  %v1430_v61 = vmul.f32 %v1429_v59, %v2372_v10  ;;  %v1266_v62 = vmul.f32 %v1265_v60, %v2372_v10  ;;  %v1633_v59 = vstv %s1972_s13  ;;  %v1469_v60 = vstv %s1958_s14  ;;  %s1896_s13 = sld [smem:[#allocation3 + $0x5b]]  ;;  %s1889_s14 = sld [smem:[#allocation3 + $0x2a]] }
 0x3df   : > { %1198 = vrot.lane.b32.xlu1 %v1196_v4, %s2127_s5  ;;  %1056 = vrot.lane.b32.xlu0 %v1054_v6, %s2129_s19  ;;  %v826_v4 = vmul.f32 %v825_v63, %v2372_v10  ;;  %v816_v6 = vmul.f32 %v815_v3, %v2372_v10  ;;  %v1634_v63 = vmul.f32 %v1633_v59, %v2372_v10 }
 0x3e0   : > { %v1470_v3 = vmul.f32 %v1469_v60, %v2372_v10 }
 0x3e3   : > { %1362 = vrot.lane.b32.xlu1 %v1360_v13, %s2127_s5  ;;  %1516 = vrot.lane.b32.xlu0 %v1514_v14, %s2126_s30  ;;  %v1286_v13 = vmul.f32 %v1285_v7, %v2372_v10  ;;  %v1276_v14 = vmul.f32 %v1275_v12, %v2372_v10 }
 0x3e7   : > { %1670 = vrot.lane.b32.xlu1 %v1668_v23, %s2125_s24  ;;  %1208 = vrot.lane.b32.xlu0 %v1206_v0, %s2128_s12  ;;  %v1594_v23 = vmul.f32 %v1593_v15, %v2372_v10  ;;  %v1122_v0 = vmul.f32 %v1121_v22, %v2372_v10  ;;  %v1533_v15 = vstv %s1965_s20  ;;  %v1643_v22 = vstv %s1973_s21  ;;  %s2580_s20 = sld [smem:[#allocation3 + $0x33]]  ;;  %s2582_s21 = sld [smem:[#allocation3 + $0x35]] }
 0x3eb   : > { %1372 = vrot.lane.b32.xlu1 %v1370_v8, %s2128_s12  ;;  %1526 = vrot.lane.b32.xlu0 %v1524_v9, %s2127_s5  ;;  %v990_v8 = vmul.f32 %v989_v1, %v2372_v10  ;;  %v980_v9 = vmul.f32 %v979_v26, %v2372_v10  ;;  %v1534_v1 = vmul.f32 %v1533_v15, %v2316_v18  ;;  %v672_v15 = vstv %s1889_s14 }
 0x3ec   : > { %v1644_v26 = vmul.f32 %v1643_v22, %v2372_v10 }
 0x3ef   : > { %1680 = vrot.lane.b32.xlu1 %v1678_v28, %s2126_s30  ;;  %642 = vrot.lane.b32.xlu0 %v640_v29, %s2126_s30  ;;  %v1450_v28 = vmul.f32 %v1449_v11, %v2372_v10  ;;  %v1440_v29 = vmul.f32 %v1439_v27, %v2372_v10 }
 0x3f3   : > { %664 = vrot.lane.b32.xlu0 %v662_v32, %s2128_s12  ;;  %620 = vrot.lane.b32.xlu1 %v618_v33, %s2124_s22  ;;  %v1142_v32 = vmul.f32 %v1141_v30, %v2372_v10  ;;  %v1132_v33 = vmul.f32 %v1131_v31, %v2372_v10  ;;  %v1707_v30 = vstv %s1980_s28  ;;  %v1687_v31 = vstv %s1978_s29  ;;  %s2590_s28 = sld [smem:[#allocation3 + $0x37]]  ;;  %s2130_s29 = smov 127  }
 0x3f4   : > { %v1708_v34 = vmul.f32 %v1707_v30, %v2316_v18  ;;  %v1688_v35 = vmul.f32 %v1687_v31, %v2316_v18  ;;  %v611_v31 = vld [vmem:[#allocation2] ss:$2 sm:$0x3] }
 0x3f7   : > { %788 = vrot.lane.b32.xlu0 %v786_v36, %s2125_s24  ;;  %631 = vrot.lane.b32.xlu1 %v629_v37, %s2125_s24 }
 0x3fb   : > { %798 = vrot.lane.b32.xlu0 %v796_v40, %s2126_s30  ;;  %653 = vrot.lane.b32.xlu1 %v651_v41, %s2127_s5  ;;  %v1613_v40 = vstv %s1970_s6  ;;  %v1603_v41 = vstv %s1969_s7  ;;  %s1891_s6 = sld [smem:[#allocation3 + $0x38]]  ;;  %s1979_s7 = sld [smem:[#allocation3 + $0x5a]] }
 0x3ff   : > { %1104 = vrot.lane.b32.xlu0 %v1102_v44, %s2124_s22  ;;  %778 = vrot.lane.b32.xlu1 %v776_v45, %s2124_s22  ;;  %v1614_v44 = vmul.f32 %v1613_v40, %v2372_v10  ;;  %v1604_v45 = vmul.f32 %v1603_v41, %v2372_v10 }
 0x403   : > { %962 = vrot.lane.b32.xlu0 %v960_v49, %s2126_s30  ;;  %942 = vrot.lane.b32.xlu1 %v940_v50, %s2124_s22 }
 0x407   : > { %1114 = vrot.lane.b32.xlu0 %v1112_v53, %s2125_s24  ;;  %952 = vrot.lane.b32.xlu1 %v950_v54, %s2125_s24  ;;  %v1623_v53 = vstv %s1971_s10  ;;  %v1151_v54 = vstv %s1931_s11  ;;  %s1895_s10 = sld [smem:[#allocation3 + $0x54]]  ;;  %s1894_s11 = sld [smem:[#allocation3 + $0x4d]] }
 0x40b   : > { %972 = vrot.lane.b32.xlu0 %v970_v57, %s2127_s5  ;;  %808 = vrot.lane.b32.xlu1 %v806_v58, %s2127_s5  ;;  %v1624_v57 = vmul.f32 %v1623_v53, %v2372_v10  ;;  %v1152_v58 = vmul.f32 %v1151_v54, %v2372_v10  ;;  %v709_v53 = vmul.f32 %v708_v46, %v2316_v18 }
 0x40c   : > { %v699_v54 = vmul.f32 %v698_v48, %v2316_v18 }
 0x40f   : > { %1432 = vrot.lane.b32.xlu0 %v1430_v61, %s2124_s22  ;;  %1268 = vrot.lane.b32.xlu1 %v1266_v62, %s2124_s22 }
 0x413   : > { %828 = vrot.lane.b32.xlu0 %v826_v4, %s2129_s19  ;;  %818 = vrot.lane.b32.xlu1 %v816_v6, %s2128_s12  ;;  %v1215_v4 = vstv %s1938_s17  ;;  %v1479_v6 = vstv %s1959_s18  ;;  %s2576_s17 = sld [smem:[#allocation3 + $0x5]]  ;;  %s2578_s18 = sld [smem:[#allocation3 + $0x6]] }
 0x417   : > { %1288 = vrot.lane.b32.xlu0 %v1286_v13, %s2126_s30  ;;  %1278 = vrot.lane.b32.xlu1 %v1276_v14, %s2125_s24  ;;  %v1216_v13 = vmul.f32 %v1215_v4, %v2316_v18  ;;  %v1480_v14 = vmul.f32 %v1479_v6, %v2372_v10  ;;  %v738_v4 = vstv %s1896_s13 }
 0x419   : > { %v1425_v24 = vstv %s2576_s17  ;;  %v1589_v19 = vstv %s2578_s18 }
 0x41b   : > { %1596 = vrot.lane.b32.xlu0 %v1594_v23, %s2124_s22  ;;  %1124 = vrot.lane.b32.xlu1 %v1122_v0, %s2126_s30 }
 0x41f   : > { %992 = vrot.lane.b32.xlu0 %v990_v8, %s2129_s19  ;;  %982 = vrot.lane.b32.xlu1 %v980_v9, %s2128_s12  ;;  %v1543_v8 = vstv %s1966_s25  ;;  %v1379_v9 = vstv %s1952_s27  ;;  %s2585_s25 = sld [smem:[#allocation3 + $0x34]]  ;;  %s2588_s27 = sld [smem:[#allocation3 + $0x36]] }
 0x423   : > { %1452 = vrot.lane.b32.xlu0 %v1450_v28, %s2126_s30  ;;  %1442 = vrot.lane.b32.xlu1 %v1440_v29, %s2125_s24  ;;  %v1544_v28 = vmul.f32 %v1543_v8, %v2316_v18  ;;  %v1380_v29 = vmul.f32 %v1379_v9, %v2316_v18 }
 0x427   : > { %1144 = vrot.lane.b32.xlu0 %v1142_v32, %s2128_s12  ;;  %1134 = vrot.lane.b32.xlu1 %v1132_v33, %s2127_s5 }
 0x429   : > { %v2436_v36 = vpop.permute.xlu1 %842  ;;  %v2438_v37 = vpop.permute.xlu0 %852 }
 0x42b   : > { %1308 = vrot.lane.b32.xlu0 %v1306_v38, %s2128_s12  ;;  %1298 = vrot.lane.b32.xlu1 %v1296_v39, %s2127_s5  ;;  %v688_v38 = vstv %s1891_s6  ;;  %v1697_v39 = vstv %s1979_s7  ;;  %s2131_s6 = smov 126   ;;  %s2132_s7 = smov 125  }
 0x42d   : > { %v2444_v42 = vpop.permute.xlu1 %1006  ;;  %v2446_v43 = vpop.permute.xlu0 %1016 }
 0x42f   : > { %1616 = vrot.lane.b32.xlu0 %v1614_v44, %s2126_s30  ;;  %1606 = vrot.lane.b32.xlu1 %v1604_v45, %s2125_s24  ;;  %v689_v44 = vmul.f32 %v688_v38, %v2316_v18  ;;  %v1698_v45 = vmul.f32 %v1697_v39, %v2316_v18 }
 0x431   : > { %v2452_v49 = vpop.permute.xlu1 %862  ;;  %v2454_v50 = vpop.permute.xlu0 %872 }
 0x433   : > { %1318 = vrot.lane.b32.xlu0 %v1316_v51, %s2129_s19  ;;  %1462 = vrot.lane.b32.xlu1 %v1460_v52, %s2127_s5 }
 0x435   : > { %v2460_v55 = vpop.permute.xlu1 %1168  ;;  %v2462_v56 = vpop.permute.xlu0 %1332 }
 0x437   : > { %1626 = vrot.lane.b32.xlu0 %v1624_v57, %s2127_s5  ;;  %1154 = vrot.lane.b32.xlu1 %v1152_v58, %s2129_s19  ;;  %v728_v57 = vstv %s1895_s10  ;;  %v718_v58 = vstv %s1894_s11  ;;  %s2134_s10 = smov 123   ;;  %s2135_s11 = smov 122  }
 0x439   : > { %v2468_v61 = vpop.permute.xlu1 %1026  ;;  %v2470_v62 = vpop.permute.xlu0 %1178 }
 0x43b   : > { %1636 = vrot.lane.b32.xlu0 %v1634_v63, %s2128_s12  ;;  %1472 = vrot.lane.b32.xlu1 %v1470_v3, %s2128_s12  ;;  %v729_v63 = vmul.f32 %v728_v57, %v2316_v18  ;;  %v719_v3 = vmul.f32 %v718_v58, %v2316_v18 }
 0x43d   : > { %v2476_v7 = vpop.permute.xlu1 %882  ;;  %v2478_v12 = vpop.permute.xlu0 %1036 }
 0x43f   : > { %1218 = vrot.lane.b32.xlu0 %v1216_v13, %s2129_s19  ;;  %1482 = vrot.lane.b32.xlu1 %v1480_v14, %s2129_s19  ;;  %v739_v14 = vmul.f32 %v738_v4, %v2316_v18 }
 0x441   : > { %v2484_v23 = vpop.permute.xlu1 %1342  ;;  %v2486_v0 = vpop.permute.xlu0 %1496 }
 0x443   : > { %1536 = vrot.lane.b32.xlu0 %v1534_v1, %s2128_s12  ;;  %1646 = vrot.lane.b32.xlu1 %v1644_v26, %s2129_s19  ;;  %v673_v26 = vmul.f32 %v672_v15, %v2372_v10 }
 0x445   : > { %v2492_v11 = vpop.permute.xlu1 %1188  ;;  %v2494_v27 = vpop.permute.xlu0 %892 }
 0x447   : > { %1546 = vrot.lane.b32.xlu0 %v1544_v28, %s2129_s19  ;;  %1382 = vrot.lane.b32.xlu1 %v1380_v29, %s2129_s19 }
 0x449   : > { %v2500_v32 = vpop.permute.xlu1 %1046  ;;  %v2502_v33 = vpop.permute.xlu0 %1352 }
 0x44b   : > { %1710 = vrot.lane.b32.xlu0 %v1708_v34, %s2129_s19  ;;  %1690 = vrot.lane.b32.xlu1 %v1688_v35, %s2127_s5 }
 0x44d   : > { %v2508_v40 = vpop.permute.xlu1 %1506  ;;  %v2510_v41 = vpop.permute.xlu0 %1660 }
 0x44f   : > { %691 = vrot.lane.b32.xlu0 %v689_v44, %s2124_s22  ;;  %1700 = vrot.lane.b32.xlu1 %v1698_v45, %s2128_s12  ;;  %s610_s22 = sld [smem:[#allocation3]] }
 0x451   : > { %v2516_v51 = vpop.permute.xlu1 %1198  ;;  %v2518_v52 = vpop.permute.xlu0 %1056 }
 0x453   : > { %711 = vrot.lane.b32.xlu0 %v709_v53, %s2126_s30  ;;  %701 = vrot.lane.b32.xlu1 %v699_v54, %s2125_s24  ;;  %s1897_s24 = sld [smem:[#allocation3 + $0x1]]  ;;  %s1911_s30 = sld [smem:[#allocation3 + $0x2]] }
 0x455   : > { %v2524_v59 = vpop.permute.xlu1 %1362  ;;  %v2526_v60 = vpop.permute.xlu0 %1516  ;;  %v612_v30 = vstv %s610_s22  ;;  %s211_s22 = scalar_lea.vmem %s2896_s4, %s1985_s23 }
 0x456   : > { %v613_v38 = vmul.f32 %v612_v30, %v611_v31 }
 0x457   : > { %731 = vrot.lane.b32.xlu0 %v729_v63, %s2128_s12  ;;  %721 = vrot.lane.b32.xlu1 %v719_v3, %s2127_s5  ;;  %s2564_s5 = sld [smem:[#allocation3 + $0x32]]  ;;  %s2570_s12 = sld [smem:[#allocation3 + $0x3]] }
 0x459   : > { %v2532_v6 = vpop.permute.xlu1 %1670  ;;  %v2534_v13 = vpop.permute.xlu0 %1208 }
 0x45a   : > { %2922 = vst [vmem:[#allocation15_spill] sm:$0xff] %v2532_v6 }
 0x45b   : > { %741 = vrot.lane.b32.xlu1 %v739_v14, %s2129_s19 }
 0x45d   : > { %v2538_v22 = vpop.permute.xlu1 %1372  ;;  %v2540_v1 = vpop.permute.xlu0 %1526 }
 0x45e   : > { %2923 = vst [vmem:[#allocation16_spill] sm:$0xff] %v2540_v1  ;;  %v874_v1 = vrot.slane %v2454_v50, 1 }
 0x45f   : > { %675 = vrot.lane.b32.xlu1 %v673_v26, %s2129_s19  ;;  %s2572_s19 = sld [smem:[#allocation3 + $0x4]] }
 0x461   : > { %v2544_v8 = vpop.permute.xlu1 %1680  ;;  %v643_v9 = vpop.permute.xlu0 %642 }
 0x462   : > { %2924 = vst [vmem:[#allocation17_spill] sm:$0xff] %v2544_v8  ;;  %v644_v45 = vrot.slane %v643_v9, 1  ;;  %v1489_v8 = vstv %s2588_s27 }
 0x464   : > { %v646_v63 = vsel %vm645_vm15, %v643_v9, %v644_v45 }
 0x465   : > { %v621_v28 = vpop.permute.xlu1 %620  ;;  %v665_v29 = vpop.permute.xlu0 %664  ;;  %v1261_v20 = vstv %s2572_s19 }
 0x466   : > { %v622_v34 = vrot.slane %v621_v28, 1  ;;  %v666_v3 = vrot.slane %v665_v29, 1 }
 0x468   : > { %v624_v35 = vsel %vm623_vm13, %v621_v28, %v622_v34  ;;  %v668_v31 = vsel %vm667_vm1, %v665_v29, %v666_v3 }
 0x469   : > { %v632_v39 = vpop.permute.xlu1 %631  ;;  %v789_v44 = vpop.permute.xlu0 %788  ;;  %v626_v48 = vadd.f32 %v624_v35, %v613_v38 }
 0x46a   : > { %v633_v46 = vrot.slane %v632_v39, 1 }
 0x46c   : > { %v635_v53 = vsel %vm634_vm14, %v632_v39, %v633_v46  ;;  %v771_v39 = vstv %s1897_s24 }
 0x46d   : > { %v637_v54 = vadd.f32 %v635_v53, %v626_v48  ;;  %v654_v57 = vpop.permute.xlu1 %653  ;;  %v799_v58 = vpop.permute.xlu0 %798  ;;  %v772_v53 = vmul.f32 %v771_v39, %v2372_v10  ;;  %v935_v39 = vstv %s1911_s30 }
 0x46e   : > { %v655_v4 = vrot.slane %v654_v57, 1  ;;  %v800_v3 = vrot.slane %v799_v58, 1 }
 0x46f   : > { %v648_v14 = vadd.f32 %v646_v63, %v637_v54  ;;  %v790_v54 = vrot.slane %v789_v44, 1 }
 0x470   : > { %v657_v15 = vsel %vm656_vm0, %v654_v57, %v655_v4 }
 0x471   : > { %v659_v26 = vadd.f32 %v657_v15, %v648_v14  ;;  %v779_v28 = vpop.permute.xlu1 %778  ;;  %v2550_v30 = vpop.permute.xlu0 %1104  ;;  %v791_v29 = vsel %vm634_vm14, %v789_v44, %v790_v54 }
 0x472   : > { %v780_v9 = vrot.slane %v779_v28, 1 }
 0x473   : > { %v2553_v34 = vadd.f32 %v668_v31, %v659_v26 }
 0x474   : > { %v781_v48 = vsel %vm623_vm13, %v779_v28, %v780_v9  ;;  %v801_v9 = vsel %vm645_vm15, %v799_v58, %v800_v3 }
 0x475   : > { %2925 = vst [vmem:[#allocation18_spill] sm:$0xff] %v2553_v34  ;;  %v943_v35 = vpop.permute.xlu1 %942  ;;  %v2555_v38 = vpop.permute.xlu0 %962  ;;  %v783_v57 = vadd.f32 %v781_v48, %v772_v53 }
 0x476   : > { %v944_v28 = vrot.slane %v943_v35, 1 }
 0x477   : > { %v793_v15 = vadd.f32 %v791_v29, %v783_v57 }
 0x478   : > { %v945_v29 = vsel %vm623_vm13, %v943_v35, %v944_v28  ;;  %v2596_v35 = vsub.s32 0, %v2305_v47 }
 0x479   : > { %v953_v45 = vpop.permute.xlu1 %952  ;;  %v2557_v46 = vpop.permute.xlu0 %1114  ;;  %v803_v53 = vadd.f32 %v801_v9, %v793_v15  ;;  %v835_v9 = vstv %s2564_s5 }
 0x47a   : > { %v954_v48 = vrot.slane %v953_v45, 1 }
 0x47d   : > { %v809_v63 = vpop.permute.xlu1 %808  ;;  %v2561_v4 = vpop.permute.xlu0 %972 }
 0x47e   : > { %v810_v14 = vrot.slane %v809_v63, 1 }
 0x480   : > { %v811_v44 = vsel %vm656_vm0, %v809_v63, %v810_v14  ;;  %v936_v63 = vmul.f32 %v935_v39, %v2372_v10  ;;  %v955_v14 = vsel %vm634_vm14, %v953_v45, %v954_v48  ;;  %v844_v45 = vrot.slane %v2436_v36, 1 }
 0x481   : > { %v2566_v26 = vpop.permute.xlu1 %1268  ;;  %v2568_v31 = vpop.permute.xlu0 %1432  ;;  %v813_v3 = vadd.f32 %v811_v44, %v803_v53  ;;  %v2603_v44 = vsub.s32 1, %v2305_v47  ;;  %v1097_v53 = vstv %s2570_s12 }
 0x482   : > { %v947_v28 = vadd.f32 %v945_v29, %v936_v63  ;;  %v836_v29 = vmul.f32 %v835_v9, %v2316_v18  ;;  %v2633_v6 = vmul.f32 %v1097_v53, %v2372_v10  ;;  %v884_v53 = vrot.slane %v2476_v7, 1 }
 0x485   : > { %v819_v54 = vpop.permute.xlu1 %818  ;;  %v829_v57 = vpop.permute.xlu0 %828 }
 0x486   : > { %v820_v25 = vrot.slane %v819_v54, 1  ;;  %v830_v58 = vrot.slane %v829_v57, 1 }
 0x488   : > { %v821_v15 = vsel %vm667_vm1, %v819_v54, %v820_v25  ;;  %v964_v25 = vrot.slane %v2555_v38, 1  ;;  %v831_v48 = vsel %vm256_vm7, %v829_v57, %v830_v58  ;;  %v957_v54 = vadd.f32 %v955_v14, %v947_v28 }
 0x489   : > { %v823_v5 = vadd.f32 %v821_v15, %v813_v3  ;;  %v2598_v17 = vpop.permute.xlu1 %1278  ;;  %v2600_v39 = vpop.permute.xlu0 %1288  ;;  %v854_v3 = vrot.slane %v2438_v37, 1  ;;  %v974_v15 = vrot.slane %v2561_v4, 1  ;;  %v999_v57 = vstv %s2580_s20 }
 0x48a   : > { %v1325_v58 = vstv %s2582_s21  ;;  %v845_v14 = vsel %vm623_vm13, %v2436_v36, %v844_v45  ;;  %v965_v9 = vsel %vm645_vm15, %v2555_v38, %v964_v25  ;;  %v1161_v28 = vstv %s2585_s25 }
 0x48b   : > { %v833_v63 = vadd.f32 %v831_v48, %v823_v5  ;;  %v864_v5 = vrot.slane %v2452_v49, 1  ;;  %v967_v48 = vadd.f32 %v965_v9, %v957_v54  ;;  %v975_v36 = vsel %vm656_vm0, %v2561_v4, %v974_v15 }
 0x48c   : > { %v1262_v45 = vmul.f32 %v1261_v20, %v2372_v10  ;;  %v2639_v38 = vmul.f32 %v1425_v24, %v2372_v10  ;;  %v1000_v20 = vmul.f32 %v999_v57, %v2316_v18  ;;  %v2649_v24 = vmul.f32 %v1325_v58, %v2316_v18 }
 0x48d   : > { %v837_v2 = vadd.f32 %v836_v29, %v833_v63  ;;  %v2614_v16 = vpop.permute.xlu1 %1124  ;;  %v2617_v21 = vpop.permute.xlu0 %1596  ;;  %v855_v63 = vsel %vm634_vm14, %v2438_v37, %v854_v3  ;;  %v865_v37 = vsel %vm645_vm15, %v2452_v49, %v864_v5  ;;  %v977_v29 = vadd.f32 %v975_v36, %v967_v48 }
 0x48e   : > { %v1008_v15 = vrot.slane %v2444_v42, 1  ;;  %v2662_v57 = vmul.f32 %v1161_v28, %v2316_v18  ;;  %v1018_v58 = vrot.slane %v2446_v43, 1  ;;  %v1170_v28 = vrot.slane %v2460_v55, 1 }
 0x48f   : > { %v847_v34 = vadd.f32 %v845_v14, %v837_v2  ;;  %v2642_v2 = vmul.f32 %v1589_v19, %v2372_v10  ;;  %v875_v19 = vsel %vm656_vm0, %v2454_v50, %v874_v1  ;;  %v894_v10 = vrot.slane %v2494_v27, 1 }
 0x490   : > { %v885_v50 = vsel %vm667_vm1, %v2476_v7, %v884_v53  ;;  %v1280_v1 = vrot.slane %v2598_v17, 1  ;;  %v1028_v53 = vrot.slane %v2468_v61, 1 }
 0x491   : > { %v857_v25 = vadd.f32 %v855_v63, %v847_v34  ;;  %v983_v54 = vpop.permute.xlu1 %982  ;;  %v993_v14 = vpop.permute.xlu0 %992  ;;  %v1270_v34 = vrot.slane %v2566_v26, 1 }
 0x492   : > { %v984_v3 = vrot.slane %v983_v54, 1  ;;  %v994_v9 = vrot.slane %v993_v14, 1 }
 0x493   : > { %v867_v4 = vadd.f32 %v865_v37, %v857_v25  ;;  %v1271_v7 = vsel %vm623_vm13, %v2566_v26, %v1270_v34  ;;  %v1281_v26 = vsel %vm634_vm14, %v2598_v17, %v1280_v1  ;;  %v1029_v17 = vsel %vm645_vm15, %v2468_v61, %v1028_v53 }
 0x494   : > { %v985_v49 = vsel %vm667_vm1, %v983_v54, %v984_v3  ;;  %v995_v25 = vsel %vm256_vm7, %v993_v14, %v994_v9  ;;  %v2673_v3 = vmul.f32 %v1489_v8, %v2316_v18  ;;  %v1009_v14 = vsel %vm623_vm13, %v2444_v42, %v1008_v15 }
 0x495   : > { %v877_v5 = vadd.f32 %v875_v19, %v867_v4  ;;  %v987_v63 = vadd.f32 %v985_v49, %v977_v29  ;;  %v2657_v48 = vpop.permute.xlu1 %1442  ;;  %v2659_v36 = vpop.permute.xlu0 %1452  ;;  %v2670_v29 = vsub.s32 2, %v2305_v47  ;;  %v1334_v4 = vrot.slane %v2462_v56, 1 }
 0x496   : > { %v895_v19 = vsel %vm256_vm7, %v2494_v27, %v894_v10  ;;  %v1019_v8 = vsel %vm634_vm14, %v2446_v43, %v1018_v58  ;;  %v1106_v27 = vrot.slane %v2550_v30, 1  ;;  %v1273_v10 = vadd.f32 %v1271_v7, %v1262_v45 }
 0x497   : > { %v997_v54 = vadd.f32 %v995_v25, %v987_v63  ;;  %v887_v37 = vadd.f32 %v885_v50, %v877_v5  ;;  %v1038_v5 = vrot.slane %v2478_v12, 1  ;;  %v2696_v15 = vsel %vm623_vm13, %v2460_v55, %v1170_v28 }
 0x498   : > { %v2700_v43 = vsel %vm623_vm13, %v2462_v56, %v1334_v4  ;;  %v1116_v63 = vrot.slane %v2557_v46, 1  ;;  %v1290_v58 = vrot.slane %v2600_v39, 1  ;;  %v1180_v45 = vrot.slane %v2470_v62, 1 }
 0x499   : > { %v1001_v47 = vadd.f32 %v1000_v20, %v997_v54  ;;  %v1135_v9 = vpop.permute.xlu1 %1134  ;;  %v2684_v49 = vpop.permute.xlu0 %1144  ;;  %v897_v18 = vadd.f32 %v895_v19, %v887_v37  ;;  %v1283_v50 = vadd.f32 %v1281_v26, %v1273_v10  ;;  %v1048_v54 = vrot.slane %v2500_v32, 1 }
 0x49a   : > { %v1107_v56 = vsel %vm623_vm13, %v2550_v30, %v1106_v27  ;;  %v1126_v37 = vrot.slane %v2614_v16, 1  ;;  %v1039_v61 = vsel %vm656_vm0, %v2478_v12, %v1038_v5  ;;  %v1058_v4 = vrot.slane %v2518_v52, 1 }
 0x49b   : > { %v1011_v34 = vadd.f32 %v1009_v14, %v1001_v47  ;;  %v906_v42 = vrot.slane %v897_v18, %v2603_v44  ;;  %v902_v20 = vrot.slane %v897_v18, %v2596_v35  ;;  %v910_v7 = vrot.slane %v897_v18, %v2670_v29 }
 0x49c   : > { %v1117_v14 = vsel %vm634_vm14, %v2557_v46, %v1116_v63  ;;  %v1291_v53 = vsel %vm645_vm15, %v2600_v39, %v1290_v58  ;;  %v1136_v47 = vrot.slane %v1135_v9, 1  ;;  %v1434_v27 = vrot.slane %v2568_v31, 1 }
 0x49d   : > { %v1021_v1 = vadd.f32 %v1019_v8, %v1011_v34  ;;  %v1299_v25 = vpop.permute.xlu1 %1298  ;;  %913 = vrot.lane.b32.xlu1 %v906_v42, %s2130_s29  ;;  %911 = vrot.lane.b32.xlu0 %v902_v20, %s2130_s29  ;;  %v1309_v55 = vpop.permute.xlu0 %1308  ;;  %v1109_v8 = vadd.f32 %v1107_v56, %v2633_v6  ;;  %v1293_v26 = vadd.f32 %v1291_v53, %v1283_v50  ;;  %v1344_v6 = vrot.slane %v2484_v23, 1 }
 0x49e   : > { %v1300_v28 = vrot.slane %v1299_v25, 1  ;;  %v2726_v18 = vsel %vm634_vm14, %v2470_v62, %v1180_v45  ;;  %v1049_v46 = vsel %vm667_vm1, %v2500_v32, %v1048_v54  ;;  %v1127_v39 = vsel %vm645_vm15, %v2614_v16, %v1126_v37 }
 0x49f   : > { %v1031_v19 = vadd.f32 %v1029_v17, %v1021_v1  ;;  %v1310_v34 = vrot.slane %v1309_v55, 1  ;;  %v1119_v42 = vadd.f32 %v1117_v14, %v1109_v8  ;;  %v1498_v58 = vrot.slane %v2486_v0, 1 }
 0x4a0   : > { %v1301_v30 = vsel %vm656_vm0, %v1299_v25, %v1300_v28  ;;  %v1059_v17 = vsel %vm256_vm7, %v2518_v52, %v1058_v4  ;;  %v1444_v62 = vrot.slane %v2657_v48, 1  ;;  %v1137_v45 = vsel %vm656_vm0, %v1135_v9, %v1136_v47 }
 0x4a1   : > { %v1041_v12 = vadd.f32 %v1039_v61, %v1031_v19  ;;  %v1607_v5 = vpop.permute.xlu1 %1606  ;;  %915 = vrot.lane.b32.xlu0 %v910_v7, %s2130_s29  ;;  %v2722_v10 = vpop.permute.xlu0 %1616  ;;  %v1303_v20 = vadd.f32 %v1301_v30, %v1293_v26  ;;  %v1190_v32 = vrot.slane %v2492_v11, 1  ;;  %v1435_v16 = vsel %vm623_vm13, %v2568_v31, %v1434_v27 }
 0x4a2   : > { %v1129_v50 = vadd.f32 %v1127_v39, %v1119_v42  ;;  %v1598_v56 = vrot.slane %v2617_v21, 1  ;;  %v1146_v37 = vrot.slane %v2684_v49, 1  ;;  %v1311_v28 = vsel %vm667_vm1, %v1309_v55, %v1310_v34 }
 0x4a3   : > { %v1051_v63 = vadd.f32 %v1049_v46, %v1041_v12  ;;  %v1313_v4 = vadd.f32 %v1311_v28, %v1303_v20  ;;  %v1345_v31 = vsel %vm634_vm14, %v2484_v23, %v1344_v6  ;;  %v1445_v7 = vsel %vm634_vm14, %v2657_v48, %v1444_v62 }
 0x4a4   : > { %v1139_v61 = vadd.f32 %v1137_v45, %v1129_v50  ;;  %v1608_v14 = vrot.slane %v1607_v5, 1  ;;  %v1191_v47 = vsel %vm645_vm15, %v2492_v11, %v1190_v32  ;;  %v1437_v55 = vadd.f32 %v1435_v16, %v2639_v38 }
 0x4a5   : > { %v1463_v1 = vpop.permute.xlu1 %1462  ;;  %v1319_v25 = vpop.permute.xlu0 %1318  ;;  %v1061_v54 = vadd.f32 %v1059_v17, %v1051_v63  ;;  %v1454_v30 = vrot.slane %v2659_v36, 1  ;;  %v1599_v23 = vsel %vm623_vm13, %v2617_v21, %v1598_v56  ;;  %v1147_v48 = vsel %vm667_vm1, %v2684_v49, %v1146_v37 }
 0x4a6   : > { %v1320_v52 = vrot.slane %v1319_v25, 1  ;;  %v1464_v12 = vrot.slane %v1463_v1, 1  ;;  %v1447_v39 = vadd.f32 %v1445_v7, %v1437_v55  ;;  %v1149_v11 = vadd.f32 %v1147_v48, %v1139_v61 }
 0x4a7   : > { %v1070_v9 = vrot.slane %v1061_v54, %v2603_v44  ;;  %v1066_v19 = vrot.slane %v1061_v54, %v2596_v35  ;;  %v1074_v34 = vrot.slane %v1061_v54, %v2670_v29  ;;  %v1354_v6 = vrot.slane %v2502_v33, 1 }
 0x4a8   : > { %v1321_v53 = vsel %vm256_vm7, %v1319_v25, %v1320_v52  ;;  %v1364_v42 = vrot.slane %v2524_v59, 1  ;;  %v1609_v20 = vsel %vm634_vm14, %v1607_v5, %v1608_v14  ;;  %v1601_v21 = vadd.f32 %v1599_v23, %v2642_v2 }
 0x4a9   : > { %v1323_v8 = vadd.f32 %v1321_v53, %v1313_v4  ;;  %v1155_v27 = vpop.permute.xlu1 %1154  ;;  %1077 = vrot.lane.b32.xlu0 %v1070_v9, %s2131_s6  ;;  %1075 = vrot.lane.b32.xlu1 %v1066_v19, %s2131_s6  ;;  %v1627_v26 = vpop.permute.xlu0 %1626  ;;  %v1455_v49 = vsel %vm645_vm15, %v2659_v36, %v1454_v30  ;;  %v1618_v32 = vrot.slane %v2722_v10, 1  ;;  %v1465_v16 = vsel %vm656_vm0, %v1463_v1, %v1464_v12 }
 0x4aa   : > { %v1156_v46 = vrot.slane %v1155_v27, 1  ;;  %v1628_v50 = vrot.slane %v1627_v26, 1  ;;  %v1457_v5 = vadd.f32 %v1455_v49, %v1447_v39  ;;  %v1611_v54 = vadd.f32 %v1609_v20, %v1601_v21 }
 0x4ab   : > { %v1327_v38 = vadd.f32 %v2649_v24, %v1323_v8  ;;  %v1355_v36 = vsel %vm645_vm15, %v2502_v33, %v1354_v6  ;;  %v1200_v52 = vrot.slane %v2516_v51, 1  ;;  %v1210_v8 = vrot.slane %v2534_v13, 1 }
 0x4ac   : > { %v1157_v63 = vsel %vm256_vm7, %v1155_v27, %v1156_v46  ;;  %v1467_v61 = vadd.f32 %v1465_v16, %v1457_v5  ;;  %v1629_v33 = vsel %vm656_vm0, %v1627_v26, %v1628_v50  ;;  %v1518_v20 = vrot.slane %v2526_v60, 1 }
 0x4ad   : > { %v1337_v17 = vadd.f32 %v2700_v43, %v1327_v38  ;;  %v1159_v62 = vadd.f32 %v1157_v63, %v1149_v11  ;;  %v1473_v45 = vpop.permute.xlu1 %1472  ;;  %1079 = vrot.lane.b32.xlu1 %v1074_v34, %s2131_s6  ;;  %v1637_v24 = vpop.permute.xlu0 %1636  ;;  %v1374_v43 = vrot.slane %v2538_v22, 1  ;;  %v1201_v39 = vsel %vm656_vm0, %v2516_v51, %v1200_v52 }
 0x4ae   : > { %v1474_v25 = vrot.slane %v1473_v45, 1  ;;  %v1638_v28 = vrot.slane %v1637_v24, 1  ;;  %v1211_v63 = vsel %vm667_vm1, %v2534_v13, %v1210_v8 }
 0x4af   : > { %v1347_v56 = vadd.f32 %v1345_v31, %v1337_v17  ;;  %v1163_v2 = vadd.f32 %v2662_v57, %v1159_v62  ;;  %v1365_v31 = vsel %vm656_vm0, %v2524_v59, %v1364_v42  ;;  %v1619_v57 = vsel %vm645_vm15, %v2722_v10, %v1618_v32  ;;  %v2082_v17 = vld [vmem:[#allocation2 + $0x1] ss:$2 sm:$0x7] }
 0x4b0   : > { %v1475_v37 = vsel %vm667_vm1, %v1473_v45, %v1474_v25  ;;  %v1621_v14 = vadd.f32 %v1619_v57, %v1611_v54  ;;  %v1639_v27 = vsel %vm667_vm1, %v1637_v24, %v1638_v28  ;;  %v1662_v42 = vrot.slane %v2510_v41, 1  ;;  %v2928_v25 = vld [vmem:[#allocation16_spill] sm:$0xff] }
 0x4b1   : > { %v1173_v1 = vadd.f32 %v2696_v15, %v1163_v2  ;;  %v1483_v4 = vpop.permute.xlu1 %1482  ;;  %v1219_v9 = vpop.permute.xlu0 %1218  ;;  %v1357_v19 = vadd.f32 %v1355_v36, %v1347_v56  ;;  %v1477_v55 = vadd.f32 %v1475_v37, %v1467_v61  ;;  %v1375_v15 = vsel %vm667_vm1, %v2538_v22, %v1374_v43  ;;  %v2929_v37 = vld [vmem:[#allocation17_spill] sm:$0xff] }
 0x4b2   : > { %v1484_v7 = vrot.slane %v1483_v4, 1  ;;  %v1631_v23 = vadd.f32 %v1629_v33, %v1621_v14  ;;  %v1220_v11 = vrot.slane %v1219_v9, 1  ;;  %v1499_v22 = vsel %vm623_vm13, %v2486_v0, %v1498_v58  ;;  %v2927_v58 = vld [vmem:[#allocation15_spill] sm:$0xff] }
 0x4b3   : > { %v1183_v53 = vadd.f32 %v2726_v18, %v1173_v1  ;;  %v1367_v30 = vadd.f32 %v1365_v31, %v1357_v19  ;;  %v1508_v18 = vrot.slane %v2508_v40, 1  ;;  %v2926_v62 = vstv %s2590_s28 }
 0x4b4   : > { %v1485_v59 = vsel %vm256_vm7, %v1483_v4, %v1484_v7  ;;  %v1641_v34 = vadd.f32 %v1639_v27, %v1631_v23  ;;  %v1654_v45 = vmul.f32 %v2082_v17, %v2926_v62  ;;  %v1672_v32 = vrot.slane %v2927_v58, 1 }
 0x4b5   : > { %v1487_v48 = vadd.f32 %v1485_v59, %v1477_v55  ;;  %v1193_v10 = vadd.f32 %v1191_v47, %v1183_v53  ;;  %v1647_v12 = vpop.permute.xlu1 %1646  ;;  %v1537_v26 = vpop.permute.xlu0 %1536  ;;  %v1377_v46 = vadd.f32 %v1375_v15, %v1367_v30  ;;  %v1221_v16 = vsel %vm256_vm7, %v1219_v9, %v1220_v11 }
 0x4b6   : > { %v1648_v38 = vrot.slane %v1647_v12, 1  ;;  %v1528_v5 = vrot.slane %v2928_v25, 1  ;;  %v1663_v36 = vsel %vm623_vm13, %v2510_v41, %v1662_v42  ;;  %v1519_v43 = vsel %vm645_vm15, %v2526_v60, %v1518_v20 }
 0x4b7   : > { %v1491_v6 = vadd.f32 %v2673_v3, %v1487_v48  ;;  %v1203_v47 = vadd.f32 %v1201_v39, %v1193_v10  ;;  %v1509_v3 = vsel %vm634_vm14, %v2508_v40, %v1508_v18  ;;  %v1682_v28 = vrot.slane %v2929_v37, 1 }
 0x4b8   : > { %v1649_v51 = vsel %vm256_vm7, %v1647_v12, %v1648_v38  ;;  %v1538_v4 = vrot.slane %v1537_v26, 1  ;;  %v1673_v19 = vsel %vm634_vm14, %v2927_v58, %v1672_v32  ;;  %v1529_v60 = vsel %vm656_vm0, %v2928_v25, %v1528_v5  ;;  %v2930_v5 = vld [vmem:[#allocation18_spill] sm:$0xff] }
 0x4b9   : > { %v1501_v21 = vadd.f32 %v1499_v22, %v1491_v6  ;;  %v1213_v49 = vadd.f32 %v1211_v63, %v1203_v47  ;;  %v1651_v24 = vadd.f32 %v1649_v51, %v1641_v34  ;;  %v1383_v0 = vpop.permute.xlu1 %1382  ;;  %v1547_v2 = vpop.permute.xlu0 %1546  ;;  %v1683_v7 = vsel %vm645_vm15, %v2929_v37, %v1682_v28 }
 0x4ba   : > { %v1384_v50 = vrot.slane %v1383_v0, 1  ;;  %v1548_v53 = vrot.slane %v1547_v2, 1  ;;  %v1539_v30 = vsel %vm667_vm1, %v1537_v26, %v1538_v4 }
 0x4bb   : > { %v1223_v13 = vadd.f32 %v1221_v16, %v1213_v49  ;;  %v1655_v54 = vadd.f32 %v1654_v45, %v1651_v24  ;;  %v1511_v56 = vadd.f32 %v1509_v3, %v1501_v21  ;;  %v683_v3 = vstv %s1890_s9 }
 0x4bc   : > { %v1385_v40 = vsel %vm256_vm7, %v1383_v0, %v1384_v50  ;;  %v682_v0 = vld [vmem:[#allocation2 + $0x1] ss:$2 sm:$0x3] }
 0x4bd   : > { %v1228_v52 = vrot.slane %v1223_v13, %v2596_v35  ;;  %v1232_v61 = vrot.slane %v1223_v13, %v2603_v44  ;;  %v1665_v1 = vadd.f32 %v1663_v36, %v1655_v54  ;;  %v1691_v9 = vpop.permute.xlu1 %1690  ;;  %v1521_v31 = vadd.f32 %v1519_v43, %v1511_v56  ;;  %v1711_v27 = vpop.permute.xlu0 %1710 }
 0x4be   : > { %v1387_v57 = vadd.f32 %v1385_v40, %v1377_v46  ;;  %v1692_v41 = vrot.slane %v1691_v9, 1  ;;  %v1236_v55 = vrot.slane %v1223_v13, %v2670_v29  ;;  %v1549_v46 = vsel %vm256_vm7, %v1547_v2, %v1548_v53  ;;  %v2931_v2 = vld [vmem:[#allocation6_spill] sm:$0xff] }
 0x4bf   : > { %v1675_v33 = vadd.f32 %v1673_v19, %v1665_v1  ;;  %1239 = vrot.lane.b32.xlu1 %v1232_v61, %s2132_s7  ;;  %1237 = vrot.lane.b32.xlu0 %v1228_v52, %s2132_s7  ;;  %v1531_v14 = vadd.f32 %v1529_v60, %v1521_v31  ;;  %v1712_v18 = vrot.slane %v1711_v27, 1  ;;  %v684_v25 = vmul.f32 %v683_v3, %v682_v0 }
 0x4c0   : > { %v1392_v8 = vrot.slane %v1387_v57, %v2596_v35  ;;  %v1693_v48 = vsel %vm656_vm0, %v1691_v9, %v1692_v41  ;;  %v1396_v26 = vrot.slane %v1387_v57, %v2603_v44  ;;  %v1400_v11 = vrot.slane %v1387_v57, %v2670_v29 }
 0x4c1   : > { %v1685_v15 = vadd.f32 %v1683_v7, %v1675_v33  ;;  %v1701_v59 = vpop.permute.xlu1 %1700  ;;  %v1541_v23 = vadd.f32 %v1539_v30, %v1531_v14  ;;  %v1713_v6 = vsel %vm256_vm7, %v1711_v27, %v1712_v18  ;;  %v692_v21 = vpop.permute.xlu0 %691  ;;  %v577_v36 = vadd.s32 128, %v2931_v2 }
 0x4c2   : > { %v1702_v10 = vrot.slane %v1701_v59, 1  ;;  %v693_v16 = vrot.slane %v692_v21, 1  ;;  %v2844_v1 = vand.u32 15, %v2931_v2 }
 0x4c3   : > { %v1695_v12 = vadd.f32 %v1693_v48, %v1685_v15  ;;  %1401 = vrot.lane.b32.xlu1 %v1392_v8, %s2133_s8  ;;  %1241 = vrot.lane.b32.xlu0 %v1236_v55, %s2132_s7  ;;  %v1551_v38 = vadd.f32 %v1549_v46, %v1541_v23  ;;  %v2846_v4 = vand.u32 15, %v577_v36 }
 0x4c4   : > { %v1703_v39 = vsel %vm667_vm1, %v1701_v59, %v1702_v10  ;;  %v694_v43 = vsel %vm623_vm13, %v692_v21, %v693_v16  ;;  %v602_v7 = vadd.s32 4294967293, %v2844_v1  ;;  %v762_v23 = vadd.s32 4294967294, %v2844_v1 }
 0x4c5   : > { %v1705_v22 = vadd.f32 %v1703_v39, %v1695_v12  ;;  %v702_v34 = vpop.permute.xlu1 %701  ;;  %v1556_v47 = vrot.slane %v1551_v38, %v2596_v35  ;;  %v1560_v42 = vrot.slane %v1551_v38, %v2603_v44  ;;  %v1564_v51 = vrot.slane %v1551_v38, %v2670_v29  ;;  %v712_v32 = vpop.permute.xlu0 %711 }
 0x4c6   : > { %v703_v54 = vrot.slane %v702_v34, 1  ;;  %v713_v37 = vrot.slane %v712_v32, 1  ;;  %v603_v14 = vadd.s32 4294967293, %v2846_v4  ;;  %vm604_vm2 = vcmp.ge.s32.totalorder %v602_v7, 0 }
 0x4c7   : > { %1405 = vrot.lane.b32.xlu1 %v1400_v11, %s2133_s8  ;;  %1403 = vrot.lane.b32.xlu0 %v1396_v26, %s2133_s8  ;;  %v1715_v20 = vadd.f32 %v1713_v6, %v1705_v22  ;;  %vm764_vm5 = vcmp.ge.s32.totalorder %v762_v23, 0  ;;  %v763_v48 = vadd.s32 4294967294, %v2846_v4  ;;  %v1253_v0 = vadd.s32 1, %v2846_v4 }
 0x4c8   : > { %v704_v40 = vsel %vm634_vm14, %v702_v34, %v703_v54  ;;  %v714_v9 = vsel %vm645_vm15, %v712_v32, %v713_v37  ;;  %vm605_vm3 = vcmp.ge.s32.totalorder %v603_v14, 0  ;;  %v927_v34 = vadd.s32 4294967295, %v2846_v4 }
 0x4c9   : > { %v722_v63 = vpop.permute.xlu1 %721  ;;  %v1720_v17 = vrot.slane %v1715_v20, %v2596_v35  ;;  %v1724_v45 = vrot.slane %v1715_v20, %v2603_v44  ;;  %v1728_v24 = vrot.slane %v1715_v20, %v2670_v29  ;;  %v732_v29 = vpop.permute.xlu0 %731  ;;  %vm765_vm6 = vcmp.ge.s32.totalorder %v763_v48, 0 }
 0x4ca   : > { %v723_v52 = vrot.slane %v722_v63, 1  ;;  %v733_v19 = vrot.slane %v732_v29, 1  ;;  %vm929_vm9 = vcmp.ge.s32.totalorder %v927_v34, 0  ;;  %vm1257_vm13 = vcmp.lt.s32.totalorder %v1253_v0, 16 }
 0x4cb   : > { %1567 = vrot.lane.b32.xlu1 %v1560_v42, %s2134_s10  ;;  %1565 = vrot.lane.b32.xlu0 %v1556_v47, %s2134_s10  ;;  %vm1571_vm14 = vcmask 1006592  }
 0x4cc   : > { %v724_v57 = vsel %vm656_vm0, %v722_v63, %v723_v52  ;;  %v734_v33 = vsel %vm667_vm1, %v732_v29, %v733_v19  ;;  %vm1735_vm1 = vcmask 998400  }
 0x4cd   : > { %v742_v49 = vpop.permute.xlu1 %741 }
 0x4ce   : > { %v743_v41 = vrot.slane %v742_v49, 1 }
 0x4cf   : > { %1569 = vrot.lane.b32.xlu0 %v1564_v51, %s2134_s10  ;;  %1729 = vrot.lane.b32.xlu1 %v1720_v17, %s2135_s11 }
 0x4d0   : > { %v744_v55 = vsel %vm256_vm7, %v742_v49, %v743_v41 }
 0x4d1   : > { %v676_v62 = vpop.permute.xlu1 %675 }
 0x4d2   : > { %v677_v58 = vrot.slane %v676_v62, 1 }
 0x4d3   : > { %1731 = vrot.lane.b32.xlu0 %v1724_v45, %s2135_s11  ;;  %1733 = vrot.lane.b32.xlu1 %v1728_v24, %s2135_s11  ;;  %v1252_v24 = vadd.s32 1, %v2844_v1 }
 0x4d4   : > { %v678_v50 = vsel %vm256_vm7, %v676_v62, %v677_v58  ;;  %vm1081_vm7 = vcmask 1031168  }
 0x4d5   : > { %v680_v13 = vadd.f32 %v678_v50, %v2930_v5  ;;  %vm1256_vm12 = vcmp.lt.s32.totalorder %v1252_v24, 16  ;;  %v1416_v50 = vadd.s32 2, %v2844_v1  ;;  %v2083_v24 = vld [vmem:[%s2191_s26] sm:$0xff] }
 0x4d7   : > { %v685_v56 = vadd.f32 %v684_v25, %v680_v13  ;;  %vm1420_vm15 = vcmp.lt.s32.totalorder %v1416_v50, 16  ;;  %v2086_v50 = vld [vmem:[%s2191_s26 + $0x30] sm:$0xff] }
 0x4d9   : > { %v696_v28 = vadd.f32 %v694_v43, %v685_v56 }
 0x4db   : > { %v706_v61 = vadd.f32 %v704_v40, %v696_v28  ;;  %v1417_v28 = vadd.s32 2, %v2846_v4 }
 0x4dd   : > { %v716_v31 = vadd.f32 %v714_v9, %v706_v61  ;;  %vm1421_vm0 = vcmp.lt.s32.totalorder %v1417_v28, 16 }
 0x4df   : > { %v726_v60 = vadd.f32 %v724_v57, %v716_v31  ;;  %v1580_v31 = vadd.s32 3, %v2844_v1  ;;  %v1581_v57 = vadd.s32 3, %v2846_v4 }
 0x4e1   : > { %v736_v53 = vadd.f32 %v734_v33, %v726_v60 }
 0x4e3   : > { %v746_v30 = vadd.f32 %v744_v55, %v736_v53 }
 0x4e5   : > { %v751_v8 = vrot.slane %v746_v30, %v2596_v35  ;;  %v755_v15 = vrot.slane %v746_v30, %v2603_v44  ;;  %v926_v44 = vadd.s32 4294967295, %v2844_v1 }
 0x4e7   : > { %v758_v27 = vsel %vm604_vm2, %v751_v8, 0.0  ;;  %v759_v59 = vsel %vm605_vm3, %v755_v15, 0.0  ;;  %vm928_vm8 = vcmp.ge.s32.totalorder %v926_v44, 0  ;;  %vm1584_vm2 = vcmp.lt.s32.totalorder %v1580_v31, 16  ;;  %v2933_v44 = vld [vmem:[#allocation7_spill] sm:$0xff] }
 0x4e8   : > { %vm1585_vm3 = vcmp.lt.s32.totalorder %v1581_v57, 16 }
 0x50f   : > { %v914_v10 = vpop.permute.xlu1 %913  ;;  %v912_v12 = vpop.permute.xlu0 %911 }
 0x510   : > { %v918_v46 = vsel %vm917_vm4, %v912_v12, %v914_v10 }
 0x511   : > { %v922_v18 = vsel %vm764_vm5, %v918_v46, 0.0 }
 0x512   : > { %v924_v39 = vadd.f32 %v922_v18, %v758_v27 }
 0x513   : > { %v916_v26 = vpop.permute.xlu0 %915 }
 0x514   : > { %v919_v11 = vsel %vm917_vm4, %v914_v10, %v916_v26 }
 0x515   : > { %v923_v38 = vsel %vm765_vm6, %v919_v11, 0.0 }
 0x516   : > { %v925_v22 = vadd.f32 %v923_v38, %v759_v59  ;;  %v2932_v38 = vld [vmem:[#allocation9_spill] sm:$0xff] }
 0x51b   : > { %v1076_v6 = vpop.permute.xlu1 %1075  ;;  %v1078_v47 = vpop.permute.xlu0 %1077 }
 0x51c   : > { %v1082_v42 = vsel %vm1081_vm7, %v1076_v6, %v1078_v47  ;;  %v2934_v6 = vld [vmem:[#allocation13_spill] sm:$0xff] }
 0x51d   : > { %v1086_v20 = vsel %vm928_vm8, %v1082_v42, 0.0  ;;  %v2935_v42 = vld [vmem:[#allocation11_spill] sm:$0xff] }
 0x51e   : > { %v1088_v63 = vadd.f32 %v1086_v20, %v924_v39 }
 0x51f   : > { %v1080_v51 = vpop.permute.xlu1 %1079 }
 0x520   : > { %v1083_v21 = vsel %vm1081_vm7, %v1078_v47, %v1080_v51 }
 0x521   : > { %v1087_v49 = vsel %vm929_vm9, %v1083_v21, 0.0  ;;  %v2937_v21 = vld [vmem:[#allocation8_spill] sm:$0xff] }
 0x522   : > { %v1089_v17 = vadd.f32 %v1087_v49, %v925_v22 }
 0x531   : > { %v1240_v62 = vpop.permute.xlu1 %1239  ;;  %v1238_v45 = vpop.permute.xlu0 %1237 }
 0x532   : > { %v1244_v32 = vsel %vm1243_vm10, %v1238_v45, %v1240_v62  ;;  %v2939_v45 = vld [vmem:[#allocation12_spill] sm:$0xff] }
 0x533   : > { %v1250_v13 = vadd.f32 %v1244_v32, %v1088_v63  ;;  %v2936_v63 = vld [vmem:[#allocation10_spill] sm:$0xff] }
 0x534   : > { %v2085_v32 = vld [vmem:[%s2191_s26 + $0x20] sm:$0xff] }
 0x535   : > { %v1402_v3 = vpop.permute.xlu1 %1401  ;;  %v1242_v58 = vpop.permute.xlu0 %1241 }
 0x536   : > { %v1245_v16 = vsel %vm1243_vm10, %v1240_v62, %v1242_v58 }
 0x537   : > { %v1251_v54 = vadd.f32 %v1245_v16, %v1089_v17  ;;  %v2938_v17 = vld [vmem:[#allocation14_spill] sm:$0xff] }
 0x539   : > { %v1406_v25 = vpop.permute.xlu1 %1405  ;;  %v1404_v5 = vpop.permute.xlu0 %1403 }
 0x53a   : > { %v1408_v56 = vsel %vm1407_vm11, %v1402_v3, %v1404_v5  ;;  %v1409_v2 = vsel %vm1407_vm11, %v1404_v5, %v1406_v25  ;;  %v2084_v3 = vld [vmem:[%s2191_s26 + $0x10] sm:$0xff]  ;;  %v2087_v5 = vld [vmem:[%s2191_s26 + $0x8] sm:$0xff] }
 0x53b   : > { %v1412_v36 = vsel %vm1256_vm12, %v1408_v56, 0.0  ;;  %v1413_v43 = vsel %vm1257_vm13, %v1409_v2, 0.0  ;;  %v2089_v2 = vld [vmem:[%s2191_s26 + $0x28] sm:$0xff] }
 0x53c   : > { %v1414_v37 = vadd.f32 %v1412_v36, %v1250_v13  ;;  %v1415_v29 = vadd.f32 %v1413_v43, %v1251_v54  ;;  %v2088_v54 = vld [vmem:[%s2191_s26 + $0x18] sm:$0xff] }
 0x53d   : > { %v1568_v40 = vpop.permute.xlu1 %1567  ;;  %v1566_v52 = vpop.permute.xlu0 %1565  ;;  %v2090_v43 = vld [vmem:[%s2191_s26 + $0x38] sm:$0xff] }
 0x53e   : > { %v1572_v61 = vsel %vm1571_vm14, %v1566_v52, %v1568_v40 }
 0x53f   : > { %v1576_v9 = vsel %vm1420_vm15, %v1572_v61, 0.0 }
 0x540   : > { %v1578_v19 = vadd.f32 %v1576_v9, %v1414_v37 }
 0x541   : > { %v1730_v41 = vpop.permute.xlu1 %1729  ;;  %v1570_v60 = vpop.permute.xlu0 %1569 }
 0x542   : > { %v1573_v33 = vsel %vm1571_vm14, %v1568_v40, %v1570_v60 }
 0x543   : > { %v1577_v7 = vsel %vm1421_vm0, %v1573_v33, 0.0 }
 0x544   : > { %v1579_v14 = vadd.f32 %v1577_v7, %v1415_v29 }
 0x545   : > { %v1734_v53 = vpop.permute.xlu1 %1733  ;;  %v1732_v55 = vpop.permute.xlu0 %1731 }
 0x546   : > { %v1736_v30 = vsel %vm1735_vm1, %v1730_v41, %v1732_v55  ;;  %v1737_v8 = vsel %vm1735_vm1, %v1732_v55, %v1734_v53 }
 0x547   : > { %v1740_v15 = vsel %vm1584_vm2, %v1736_v30, 0.0  ;;  %v1741_v27 = vsel %vm1585_vm3, %v1737_v8, 0.0 }
 0x548   : > { %v1742_v59 = vadd.f32 %v1740_v15, %v1578_v19  ;;  %v1743_v23 = vadd.f32 %v1741_v27, %v1579_v14 }
 0x54a   : > { %v1981_v48 = vmul.f32 -1.442695, %v1742_v59  ;;  %v1982_v1 = vmul.f32 -1.442695, %v1743_v23 }
 0x54c   : > { %2074 = vpow2.f32 %v1981_v48 }
 0x54d   : > { %2076 = vpow2.f32 %v1982_v1 }
 0x556   : > { %v2075_v4 = vpop.eup %2074 }
 0x557   : > { %v2077_v10 = vpop.eup %2076  ;;  %v1750_v12 = vadd.f32 1.0, %v2075_v4 }
 0x558   : > { %v1751_v46 = vadd.f32 1.0, %v2077_v10 }
 0x559   : > { %2078 = vrcp.f32 %v1750_v12 }
 0x55a   : > { %2080 = vrcp.f32 %v1751_v46 }
 0x563   : > { %v2079_v18 = vpop.eup %2078 }
 0x564   : > { %v2081_v39 = vpop.eup %2080  ;;  %v1759_v26 = vrot.slane %v2079_v18, %v2596_v35 }
 0x565   : > { %v1763_v11 = vrot.slane %v2081_v39, %v2596_v35 }
 0x566   : > { %v1764_v22 = vmul.f32 %v1759_v26, %v2932_v38  ;;  %v1766_v34 = vmul.f32 %v1759_v26, %v2933_v44  ;;  %v1768_v47 = vmul.f32 %v1759_v26, %v2934_v6  ;;  %v1770_v20 = vmul.f32 %v1759_v26, %v2935_v42 }
 0x567   : > { %v1765_v51 = vmul.f32 %v1763_v11, %v2936_v63  ;;  %v1767_v49 = vmul.f32 %v1763_v11, %v2937_v21  ;;  %v1769_v62 = vmul.f32 %v1763_v11, %v2938_v17  ;;  %v1771_v35 = vmul.f32 %v1763_v11, %v2939_v45 }
 0x568   : > { %v1772_v0 = vadd.f32 %v2083_v24, %v1764_v22  ;;  %v1774_v58 = vadd.f32 %v2084_v3, %v1766_v34  ;;  %v1776_v16 = vadd.f32 %v2085_v32, %v1768_v47  ;;  %v1778_v25 = vadd.f32 %v2086_v50, %v1770_v20 }
 0x569   : > { %v1773_v13 = vadd.f32 %v2087_v5, %v1765_v51  ;;  %v1775_v56 = vadd.f32 %v2088_v54, %v1767_v49  ;;  %v1777_v36 = vadd.f32 %v2089_v2, %v1769_v62  ;;  %v1779_v37 = vadd.f32 %v2090_v43, %v1771_v35 }
 0x56a   : > { %v1780_v29 = vmax.f32 %v1772_v0, 0.0  ;;  %v1782_v28 = vmax.f32 %v1774_v58, 0.0  ;;  %v1784_v40 = vmax.f32 %v1776_v16, 0.0  ;;  %v1786_v52 = vmax.f32 %v1778_v25, 0.0 }
 0x56b   : > { %v1781_v61 = vmax.f32 %v1773_v13, 0.0  ;;  %v1783_v9 = vmax.f32 %v1775_v56, 0.0  ;;  %v1785_v19 = vmax.f32 %v1777_v36, 0.0  ;;  %v1787_v31 = vmax.f32 %v1779_v37, 0.0 }
 0x56c   : > { %1788 = vst [vmem:[%s211_s22] sm:$0xff] %v1780_v29  ;;  %1790 = vst [vmem:[%s211_s22 + $0x10] sm:$0xff] %v1782_v28 }
 0x56d   : > { %1792 = vst [vmem:[%s211_s22 + $0x20] sm:$0xff] %v1784_v40  ;;  %1794 = vst [vmem:[%s211_s22 + $0x30] sm:$0xff] %v1786_v52 }
 0x56e   : > { %1789 = vst [vmem:[%s211_s22 + $0x8] sm:$0xff] %v1781_v61  ;;  %1791 = vst [vmem:[%s211_s22 + $0x18] sm:$0xff] %v1783_v9 }
 0x56f   : > { %1793 = vst [vmem:[%s211_s22 + $0x28] sm:$0xff] %v1785_v19  ;;  %1795 = vst [vmem:[%s211_s22 + $0x38] sm:$0xff] %v1787_v31 }
 0x570 PF: > { %s15_s15 = sadd.s32 1, %s2116_s15  }
 0x571   : > { %p12_p1 = scmp.ge.s32.totalorder %s15_s15, 4  }
 0x573   :  { %14 = sbr.rel (!%p12_p1) target bundleno = 1 (0x1), region = 72 }
 0x57a   :  { %1817 = vsyncpa [#allocation4], 1 }
 0x57b   :  { %1819 = vsyncpa [#allocation4 + $0x1], 1 }

</bundles_post_ra>
